<compile_context>
chip_gen: v6e
topology: v6e:2x2x1
jax: 0.10.0
libtpu: 0.0.40
codegen_flags: <defaults>
</compile_context>

<pallas_src>
import functools

import jax
import jax.numpy as jnp
from jax.experimental import pallas as pl
from jax.experimental.pallas import tpu as pltpu


_KH = 5                      # conv kernel height
_ROWPAD1 = 8                 # zero rows appended to each input tile (conv1 row shifts)
_ROWPAD2 = 8                 # zero rows appended to the pooled 14x14 grid (conv2 shifts)
# Static guarantees that shifted row reads stay inside their (padded) refs.
assert _ROWPAD1 >= _KH - 1, "input tile row padding must cover conv1 kh shifts"
assert _ROWPAD2 >= _KH - 1, "pooled grid row padding must cover conv2 kh shifts"


# ------------------------------ fused kernel --------------------------------

def _lenet_kernel(xs_ref, m1_ref, c1b_ref, m2_ref, c2b_ref,
                  wf1_ref, bf1_ref, wf2_ref, bf2_ref, wf3_ref, bf3_ref,
                  out_ref,
                  wp1_ref, u1_ref, wp2_ref, v_ref, *, bt):
    f32 = jnp.float32
    R1 = bt * 32            # conv1 rows in this tile: (image, h)
    R2 = bt * 14            # conv2 rows in this tile: (image, pooled h)

    # ---- conv1 + ReLU: 5 banded matmuls over row-shifted input slabs.
    #      output lanes = (j, w//2, oc), j = w parity, 2*14*6 = 168 lanes.
    y1 = jnp.dot(xs_ref[pl.ds(0, R1), :], m1_ref[0], preferred_element_type=f32)
    for ki in range(1, _KH):
        y1 = y1 + jnp.dot(xs_ref[pl.ds(ki, R1), :], m1_ref[ki],
                          preferred_element_type=f32)
    y1 = jnp.maximum(y1 + c1b_ref[...], 0.0)                      # (R1, 168)

    # ---- pool1, w direction: max of the two contiguous parity groups (lane-dense).
    wp1_ref[...] = jnp.maximum(y1[:, :84], y1[:, 84:])            # (R1, 84)

    # ---- pool1, h direction + stride-2 row compaction into the 14x14 grid.
    for b in range(bt):
        u1_ref[pl.ds(b * 14, 14), :] = jnp.maximum(
            wp1_ref[pl.ds(b * 32, 14, stride=2), :],
            wp1_ref[pl.ds(b * 32 + 1, 14, stride=2), :])
    u1_ref[pl.ds(R2, _ROWPAD2), :] = jnp.zeros((_ROWPAD2, 84), f32)  # defined tail

    # ---- conv2 (bn1 pre-folded) + ReLU: 5 banded matmuls, lanes = (j, w//2, oc), 160.
    y2 = jnp.dot(u1_ref[pl.ds(0, R2), :], m2_ref[0], preferred_element_type=f32)
    for ki in range(1, _KH):
        y2 = y2 + jnp.dot(u1_ref[pl.ds(ki, R2), :], m2_ref[ki],
                          preferred_element_type=f32)
    y2 = jnp.maximum(y2 + c2b_ref[...], 0.0)                      # (R2, 160)

    # ---- pool2, w direction (lane-dense parity max).
    wp2_ref[...] = jnp.maximum(y2[:, :80], y2[:, 80:])            # (R2, 80)

    # ---- pool2, h direction + flatten: 5 batch-strided read pairs (no per-sample loop).
    for p in range(5):
        v_ref[:, p * 80:(p + 1) * 80] = jnp.maximum(
            wp2_ref[pl.ds(2 * p, bt, stride=14), :],
            wp2_ref[pl.ds(2 * p + 1, bt, stride=14), :])          # (bt, 80)

    # ---- fc1 (bn2 pre-folded) + ReLU, fc2 + ReLU, dropout(eval)=identity, fc3.
    h = jnp.maximum(
        jnp.dot(v_ref[...], wf1_ref[...], preferred_element_type=f32) + bf1_ref[...],
        0.0)
    h = jnp.maximum(
        jnp.dot(h, wf2_ref[...], preferred_element_type=f32) + bf2_ref[...], 0.0)
    out_ref[...] = jnp.dot(h, wf3_ref[...], preferred_element_type=f32) + bf3_ref[...]


# --------------------------- wrapper / param prep ---------------------------

def _bn_scale_shift(gamma, beta, mean, var, eps=1e-5):
    s = gamma / jnp.sqrt(var + eps)
    return s, beta - mean * s


def _band_matrix(wk, in_w, out_pos):
    """Block-Toeplitz matrix for a 1-D (width) correlation at fixed kernel row.

    wk: (out_c, in_c, K) weight slice.  Returns M of shape (in_w*in_c, P*out_c) with
    M[wi*in_c + ci, p*out_c + co] = wk[co, ci, wi - out_pos[p]] when 0 <= wi-pos < K.
    """
    out_c, in_c, K = wk.shape
    wi = jnp.arange(in_w)[:, None]                    # (in_w, 1)
    kk = wi - out_pos[None, :]                        # (in_w, P)
    valid = (kk >= 0) & (kk < K)
    kk_c = jnp.clip(kk, 0, K - 1)
    tap = jnp.transpose(wk, (2, 1, 0))                # (K, in_c, out_c)
    g = tap[kk_c]                                     # (in_w, P, in_c, out_c)
    g = jnp.where(valid[:, :, None, None], g, 0.0)
    return jnp.transpose(g, (0, 2, 1, 3)).reshape(in_w * in_c, out_pos.shape[0] * out_c)


def _prepare_operands(params, x, bt, num_tiles):
    """Fold eval-mode BN downstream and build lane-dense banded conv matrices."""
    B = x.shape[0]
    Bp = bt * num_tiles

    # Input: rows = (image, h), lanes = w*3 + c; zero-pad batch and per-tile row tail.
    xs = x.transpose(0, 2, 3, 1).reshape(B, 32, 96)
    if Bp != B:
        xs = jnp.concatenate([xs, jnp.zeros((Bp - B, 32, 96), xs.dtype)], axis=0)
    xs = xs.reshape(num_tiles, bt * 32, 96)
    xs = jnp.pad(xs, ((0, 0), (0, _ROWPAD1), (0, 0)))
    xs = xs.reshape(num_tiles * (bt * 32 + _ROWPAD1), 96)

    # conv1: output positions ordered (parity j, w//2) -> lanes (j*14 + wp)*6 + oc.
    pos1 = jnp.concatenate([2 * jnp.arange(14), 2 * jnp.arange(14) + 1])
    m1 = jnp.stack([_band_matrix(params["conv1_w"][:, :, ki, :], 32, pos1)
                    for ki in range(_KH)])                        # (5, 96, 168)
    c1b = jnp.tile(params["conv1_b"], 28).reshape(1, 168)

    # Fold bn1 (applied to conv2's input) into conv2.
    s1, t1 = _bn_scale_shift(params["bn1_gamma"], params["bn1_beta"],
                             params["bn1_mean"], params["bn1_var"])
    w2 = params["conv2_w"]
    w2f = w2 * s1[None, :, None, None]
    b2f = params["conv2_b"] + jnp.sum(w2 * t1[None, :, None, None], axis=(1, 2, 3))
    pos2 = jnp.concatenate([2 * jnp.arange(5), 2 * jnp.arange(5) + 1])
    m2 = jnp.stack([_band_matrix(w2f[:, :, ki, :], 14, pos2)
                    for ki in range(_KH)])                        # (5, 84, 160)
    c2b = jnp.tile(b2f, 10).reshape(1, 160)

    # Fold bn2 (applied to fc1's input) into fc1; reorder columns to (p*5+q)*16 + oc.
    s2, t2 = _bn_scale_shift(params["bn2_gamma"], params["bn2_beta"],
                             params["bn2_mean"], params["bn2_var"])
    wf1 = params["fc1_w"]                              # (120, 400), col = oc*25 + r
    wf1f = wf1 * jnp.repeat(s2, 25)[None, :]
    bf1f = params["fc1_b"] + wf1 @ jnp.repeat(t2, 25)
    wf1m = wf1f.reshape(120, 16, 25).transpose(2, 1, 0).reshape(400, 120)
    bf1 = bf1f.reshape(1, 120)

    wf2m = params["fc2_w"].T
    bf2 = params["fc2_b"].reshape(1, 84)
    wf3m = params["fc3_w"].T
    bf3 = params["fc3_b"].reshape(1, 10)
    return (xs, m1, c1b, m2, c2b, wf1m, bf1, wf2m, bf2, wf3m, bf3)


def _full_spec(a):
    zeros = (0,) * a.ndim
    return pl.BlockSpec(a.shape, lambda i, _z=zeros: _z)


def lenet_forward(params, x, batch_tile=8):
    """x: (B, 3, 32, 32) float32 NCHW -> (B, 10). Eval-mode LeNet, one fused kernel."""
    B = x.shape[0]
    bt = min(batch_tile, B)
    num_tiles = -(-B // bt)
    Bp = bt * num_tiles
    R1, R2 = bt * 32, bt * 14
    xs_rows = R1 + _ROWPAD1

    operands = _prepare_operands(params, x, bt, num_tiles)
    in_specs = ([pl.BlockSpec((xs_rows, 96), lambda i: (i, 0))]
                + [_full_spec(op) for op in operands[1:]])

    out = pl.pallas_call(
        functools.partial(_lenet_kernel, bt=bt),
        out_shape=jax.ShapeDtypeStruct((Bp, 10), jnp.float32),
        grid=(num_tiles,),
        in_specs=in_specs,
        out_specs=pl.BlockSpec((bt, 10), lambda i: (i, 0)),
        scratch_shapes=[
            pltpu.VMEM((R1, 84), jnp.float32),                 # conv1 w-pooled rows
            pltpu.VMEM((R2 + _ROWPAD2, 84), jnp.float32),      # pooled 14x14 grid
            pltpu.VMEM((R2, 80), jnp.float32),                 # conv2 w-pooled rows
            pltpu.VMEM((bt, 400), jnp.float32),                # flattened fc1 input
        ],
        compiler_params=pltpu.CompilerParams(
            dimension_semantics=("parallel",)),
    )(*operands)
    return out[:B]


# --------------------------- reference & test setup --------------------------

def lenet_reference(params, x, eps=1e-5):
    """Pure-JAX/XLA reference with PyTorch eval-mode semantics."""
    def conv(y, w, b):
        return jax.lax.conv_general_dilated(
            y, w, (1, 1), "VALID",
            dimension_numbers=("NCHW", "OIHW", "NCHW")) + b[None, :, None, None]

    def pool2(y):
        return jax.lax.reduce_window(y, -jnp.inf, jax.lax.max,
                                     (1, 1, 2, 2), (1, 1, 2, 2), "VALID")

    def bn(y, g, b, m, v):
        return (y - m[None, :, None, None]) * (
            g / jnp.sqrt(v + eps))[None, :, None, None] + b[None, :, None, None]

    y = jax.nn.relu(conv(x, params["conv1_w"], params["conv1_b"]))
    y = bn(pool2(y), params["bn1_gamma"], params["bn1_beta"],
           params["bn1_mean"], params["bn1_var"])
    y = jax.nn.relu(conv(y, params["conv2_w"], params["conv2_b"]))
    y = bn(pool2(y), params["bn2_gamma"], params["bn2_beta"],
           params["bn2_mean"], params["bn2_var"])
    y = y.reshape(y.shape[0], -1)
    y = jax.nn.relu(y @ params["fc1_w"].T + params["fc1_b"])
    y = jax.nn.relu(y @ params["fc2_w"].T + params["fc2_b"])
    return y @ params["fc3_w"].T + params["fc3_b"]   # dropout == identity in eval


def init_params(key):
    ks = jax.random.split(key, 18)
    p = {}
    p["conv1_w"] = 0.05 * jax.random.normal(ks[0], (6, 3, 5, 5), jnp.float32)
    p["conv1_b"] = 0.01 * jax.random.normal(ks[1], (6,), jnp.float32)
    p["bn1_gamma"] = 1.0 + 0.1 * jax.random.normal(ks[2], (6,), jnp.float32)
    p["bn1_beta"] = 0.1 * jax.random.normal(ks[3], (6,), jnp.float32)
    p["bn1_mean"] = 0.1 * jax.random.normal(ks[4], (6,), jnp.float32)
    p["bn1_var"] = 0.5 + jax.random.uniform(ks[5], (6,), jnp.float32)
    p["conv2_w"] = 0.05 * jax.random.normal(ks[6], (16, 6, 5, 5), jnp.float32)
    p["conv2_b"] = 0.01 * jax.random.normal(ks[7], (16,), jnp.float32)
    p["bn2_gamma"] = 1.0 + 0.1 * jax.random.normal(ks[8], (16,), jnp.float32)
    p["bn2_beta"] = 0.1 * jax.random.normal(ks[9], (16,), jnp.float32)
    p["bn2_mean"] = 0.1 * jax.random.normal(ks[10], (16,), jnp.float32)
    p["bn2_var"] = 0.5 + jax.random.uniform(ks[11], (16,), jnp.float32)
    p["fc1_w"] = 0.05 * jax.random.normal(ks[12], (120, 16 * 5 * 5), jnp.float32)
    p["fc1_b"] = 0.01 * jax.random.normal(ks[13], (120,), jnp.float32)
    p["fc2_w"] = 0.05 * jax.random.normal(ks[14], (84, 120), jnp.float32)
    p["fc2_b"] = 0.01 * jax.random.normal(ks[15], (84,), jnp.float32)
    p["fc3_w"] = 0.05 * jax.random.normal(ks[16], (10, 84), jnp.float32)
    p["fc3_b"] = 0.01 * jax.random.normal(ks[17], (10,), jnp.float32)
    return p


if __name__ == "__main__":
    key = jax.random.PRNGKey(0)
    k_param, k_x = jax.random.split(key)
    params = init_params(k_param)
    x = jax.random.normal(k_x, (2, 3, 32, 32), dtype=jnp.float32)

    out = jax.block_until_ready(jax.jit(lenet_forward)(params, x))
    assert out.shape == (2, 10) and out.dtype == jnp.float32

    ref = jax.block_until_ready(jax.jit(lenet_reference)(params, x))
    assert jnp.allclose(out, ref, atol=5e-3, rtol=5e-2), (
        "mismatch vs reference, max abs diff = "
        f"{float(jnp.max(jnp.abs(out - ref)))}")
    print("KERNEL_OK")
</pallas_src>

<mosaic_0001>
module attributes {stable_mosaic.version = 11 : i64} {
  func.func @_lenet_kernel(%arg0: i32, %arg1: memref<72x96xf32, #tpu.memory_space<vmem>>, %arg2: memref<5x96x168xf32, #tpu.memory_space<vmem>>, %arg3: memref<1x168xf32, #tpu.memory_space<vmem>>, %arg4: memref<5x84x160xf32, #tpu.memory_space<vmem>>, %arg5: memref<1x160xf32, #tpu.memory_space<vmem>>, %arg6: memref<400x120xf32, #tpu.memory_space<vmem>>, %arg7: memref<1x120xf32, #tpu.memory_space<vmem>>, %arg8: memref<120x84xf32, #tpu.memory_space<vmem>>, %arg9: memref<1x84xf32, #tpu.memory_space<vmem>>, %arg10: memref<84x10xf32, #tpu.memory_space<vmem>>, %arg11: memref<1x10xf32, #tpu.memory_space<vmem>>, %arg12: memref<2x10xf32, #tpu.memory_space<vmem>>, %arg13: memref<64x84xf32, #tpu.memory_space<vmem>>, %arg14: memref<36x84xf32, #tpu.memory_space<vmem>>, %arg15: memref<28x80xf32, #tpu.memory_space<vmem>>, %arg16: memref<2x400xf32, #tpu.memory_space<vmem>>) attributes {dimension_semantics = [#tpu.dimension_semantics<parallel>], iteration_bounds = array<i64: 1>, scalar_prefetch = 0 : i64, scratch_operands = 4 : i64, tpu.core_type = #tpu.core_type<tc>, window_params = [{transform_indices = @transform_0, window_bounds = array<i64: 72, 96>}, {pipeline_mode = #tpu.pipeline_mode<synchronous>, transform_indices = @transform_1, window_bounds = array<i64: 5, 96, 168>}, {pipeline_mode = #tpu.pipeline_mode<synchronous>, transform_indices = @transform_2, window_bounds = array<i64: 1, 168>}, {pipeline_mode = #tpu.pipeline_mode<synchronous>, transform_indices = @transform_3, window_bounds = array<i64: 5, 84, 160>}, {pipeline_mode = #tpu.pipeline_mode<synchronous>, transform_indices = @transform_4, window_bounds = array<i64: 1, 160>}, {pipeline_mode = #tpu.pipeline_mode<synchronous>, transform_indices = @transform_5, window_bounds = array<i64: 400, 120>}, {pipeline_mode = #tpu.pipeline_mode<synchronous>, transform_indices = @transform_6, window_bounds = array<i64: 1, 120>}, {pipeline_mode = #tpu.pipeline_mode<synchronous>, transform_indices = @transform_7, window_bounds = array<i64: 120, 84>}, {pipeline_mode = #tpu.pipeline_mode<synchronous>, transform_indices = @transform_8, window_bounds = array<i64: 1, 84>}, {pipeline_mode = #tpu.pipeline_mode<synchronous>, transform_indices = @transform_9, window_bounds = array<i64: 84, 10>}, {pipeline_mode = #tpu.pipeline_mode<synchronous>, transform_indices = @transform_10, window_bounds = array<i64: 1, 10>}, {transform_indices = @transform_11, window_bounds = array<i64: 2, 10>}]} {
    %c0 = arith.constant 0 : index
    %c0_0 = arith.constant 0 : index
    %0 = vector.load %arg1[%c0, %c0_0] : memref<72x96xf32, #tpu.memory_space<vmem>>, vector<64x96xf32>
    %c0_1 = arith.constant 0 : index
    %c0_2 = arith.constant 0 : index
    %c0_3 = arith.constant 0 : index
    %1 = vector.load %arg2[%c0_1, %c0_2, %c0_3] : memref<5x96x168xf32, #tpu.memory_space<vmem>>, vector<1x96x168xf32>
    %2 = vector.shape_cast %1 : vector<1x96x168xf32> to vector<96x168xf32>
    %cst = arith.constant dense<0.000000e+00> : vector<64x168xf32>
    %3 = tpu.matmul %0, %2, %cst {dimension_numbers = #tpu.dot_dimension_numbers<[1], [0], [0], [1], [0, 0, 1, 1], [], []>} : vector<64x96xf32>, vector<96x168xf32>, vector<64x168xf32> -> vector<64x168xf32>
    %c1 = arith.constant 1 : index
    %c0_4 = arith.constant 0 : index
    %4 = vector.load %arg1[%c1, %c0_4] : memref<72x96xf32, #tpu.memory_space<vmem>>, vector<64x96xf32>
    %c1_5 = arith.constant 1 : index
    %c0_6 = arith.constant 0 : index
    %c0_7 = arith.constant 0 : index
    %5 = vector.load %arg2[%c1_5, %c0_6, %c0_7] : memref<5x96x168xf32, #tpu.memory_space<vmem>>, vector<1x96x168xf32>
    %6 = vector.shape_cast %5 : vector<1x96x168xf32> to vector<96x168xf32>
    %cst_8 = arith.constant dense<0.000000e+00> : vector<64x168xf32>
    %7 = tpu.matmul %4, %6, %cst_8 {dimension_numbers = #tpu.dot_dimension_numbers<[1], [0], [0], [1], [0, 0, 1, 1], [], []>} : vector<64x96xf32>, vector<96x168xf32>, vector<64x168xf32> -> vector<64x168xf32>
    %8 = arith.addf %3, %7 : vector<64x168xf32>
    %c2 = arith.constant 2 : index
    %c0_9 = arith.constant 0 : index
    %9 = vector.load %arg1[%c2, %c0_9] : memref<72x96xf32, #tpu.memory_space<vmem>>, vector<64x96xf32>
    %c2_10 = arith.constant 2 : index
    %c0_11 = arith.constant 0 : index
    %c0_12 = arith.constant 0 : index
    %10 = vector.load %arg2[%c2_10, %c0_11, %c0_12] : memref<5x96x168xf32, #tpu.memory_space<vmem>>, vector<1x96x168xf32>
    %11 = vector.shape_cast %10 : vector<1x96x168xf32> to vector<96x168xf32>
    %cst_13 = arith.constant dense<0.000000e+00> : vector<64x168xf32>
    %12 = tpu.matmul %9, %11, %cst_13 {dimension_numbers = #tpu.dot_dimension_numbers<[1], [0], [0], [1], [0, 0, 1, 1], [], []>} : vector<64x96xf32>, vector<96x168xf32>, vector<64x168xf32> -> vector<64x168xf32>
    %13 = arith.addf %8, %12 : vector<64x168xf32>
    %c3 = arith.constant 3 : index
    %c0_14 = arith.constant 0 : index
    %14 = vector.load %arg1[%c3, %c0_14] : memref<72x96xf32, #tpu.memory_space<vmem>>, vector<64x96xf32>
    %c3_15 = arith.constant 3 : index
    %c0_16 = arith.constant 0 : index
    %c0_17 = arith.constant 0 : index
    %15 = vector.load %arg2[%c3_15, %c0_16, %c0_17] : memref<5x96x168xf32, #tpu.memory_space<vmem>>, vector<1x96x168xf32>
    %16 = vector.shape_cast %15 : vector<1x96x168xf32> to vector<96x168xf32>
    %cst_18 = arith.constant dense<0.000000e+00> : vector<64x168xf32>
    %17 = tpu.matmul %14, %16, %cst_18 {dimension_numbers = #tpu.dot_dimension_numbers<[1], [0], [0], [1], [0, 0, 1, 1], [], []>} : vector<64x96xf32>, vector<96x168xf32>, vector<64x168xf32> -> vector<64x168xf32>
    %18 = arith.addf %13, %17 : vector<64x168xf32>
    %c4 = arith.constant 4 : index
    %c0_19 = arith.constant 0 : index
    %19 = vector.load %arg1[%c4, %c0_19] : memref<72x96xf32, #tpu.memory_space<vmem>>, vector<64x96xf32>
    %c4_20 = arith.constant 4 : index
    %c0_21 = arith.constant 0 : index
    %c0_22 = arith.constant 0 : index
    %20 = vector.load %arg2[%c4_20, %c0_21, %c0_22] : memref<5x96x168xf32, #tpu.memory_space<vmem>>, vector<1x96x168xf32>
    %21 = vector.shape_cast %20 : vector<1x96x168xf32> to vector<96x168xf32>
    %cst_23 = arith.constant dense<0.000000e+00> : vector<64x168xf32>
    %22 = tpu.matmul %19, %21, %cst_23 {dimension_numbers = #tpu.dot_dimension_numbers<[1], [0], [0], [1], [0, 0, 1, 1], [], []>} : vector<64x96xf32>, vector<96x168xf32>, vector<64x168xf32> -> vector<64x168xf32>
    %23 = arith.addf %18, %22 : vector<64x168xf32>
    %c0_24 = arith.constant 0 : index
    %c0_25 = arith.constant 0 : index
    %24 = vector.load %arg3[%c0_24, %c0_25] : memref<1x168xf32, #tpu.memory_space<vmem>>, vector<1x168xf32>
    %25 = vector.broadcast %24 : vector<1x168xf32> to vector<64x168xf32>
    %26 = arith.addf %23, %25 : vector<64x168xf32>
    %cst_26 = arith.constant 0.000000e+00 : f32
    %27 = vector.broadcast %cst_26 : f32 to vector<64x168xf32>
    %28 = arith.maximumf %26, %27 : vector<64x168xf32>
    %29 = vector.extract_strided_slice %28 {offsets = [0, 0], sizes = [64, 84], strides = [1, 1]} : vector<64x168xf32> to vector<64x84xf32>
    %30 = vector.extract_strided_slice %28 {offsets = [0, 84], sizes = [64, 84], strides = [1, 1]} : vector<64x168xf32> to vector<64x84xf32>
    %31 = arith.maximumf %29, %30 : vector<64x84xf32>
    %c0_27 = arith.constant 0 : index
    %c0_28 = arith.constant 0 : index
    %32 = vector.load %arg13[%c0_27, %c0_28] : memref<64x84xf32, #tpu.memory_space<vmem>>, vector<64x84xf32>
    tpu.vector_store %arg13[%c0_27, %c0_28], %31 {strides = array<i32>} : memref<64x84xf32, #tpu.memory_space<vmem>>, vector<64x84xf32>,
    %c0_29 = arith.constant 0 : index
    %c0_30 = arith.constant 0 : index
    %33 = tpu.strided_load %arg13[%c0_29, %c0_30] {strides = array<i32: 2, 1>} : memref<64x84xf32, #tpu.memory_space<vmem>>, vector<14x84xf32>
    %c1_31 = arith.constant 1 : index
    %c0_32 = arith.constant 0 : index
    %34 = tpu.strided_load %arg13[%c1_31, %c0_32] {strides = array<i32: 2, 1>} : memref<64x84xf32, #tpu.memory_space<vmem>>, vector<14x84xf32>
    %35 = arith.maximumf %33, %34 : vector<14x84xf32>
    %c0_33 = arith.constant 0 : index
    %c0_34 = arith.constant 0 : index
    %36 = vector.load %arg14[%c0_33, %c0_34] : memref<36x84xf32, #tpu.memory_space<vmem>>, vector<14x84xf32>
    tpu.vector_store %arg14[%c0_33, %c0_34], %35 {strides = array<i32>} : memref<36x84xf32, #tpu.memory_space<vmem>>, vector<14x84xf32>,
    %c32 = arith.constant 32 : index
    %c0_35 = arith.constant 0 : index
    %37 = tpu.strided_load %arg13[%c32, %c0_35] {strides = array<i32: 2, 1>} : memref<64x84xf32, #tpu.memory_space<vmem>>, vector<14x84xf32>
    %c33 = arith.constant 33 : index
    %c0_36 = arith.constant 0 : index
    %38 = tpu.strided_load %arg13[%c33, %c0_36] {strides = array<i32: 2, 1>} : memref<64x84xf32, #tpu.memory_space<vmem>>, vector<14x84xf32>
    %39 = arith.maximumf %37, %38 : vector<14x84xf32>
    %c14 = arith.constant 14 : index
    %c0_37 = arith.constant 0 : index
    %40 = vector.load %arg14[%c14, %c0_37] : memref<36x84xf32, #tpu.memory_space<vmem>>, vector<14x84xf32>
    tpu.vector_store %arg14[%c14, %c0_37], %39 {strides = array<i32>} : memref<36x84xf32, #tpu.memory_space<vmem>>, vector<14x84xf32>,
    %cst_38 = arith.constant 0.000000e+00 : f32
    %41 = vector.broadcast %cst_38 : f32 to vector<8x84xf32>
    %c28 = arith.constant 28 : index
    %c0_39 = arith.constant 0 : index
    %42 = vector.load %arg14[%c28, %c0_39] : memref<36x84xf32, #tpu.memory_space<vmem>>, vector<8x84xf32>
    tpu.vector_store %arg14[%c28, %c0_39], %41 {strides = array<i32>} : memref<36x84xf32, #tpu.memory_space<vmem>>, vector<8x84xf32>,
    %c0_40 = arith.constant 0 : index
    %c0_41 = arith.constant 0 : index
    %43 = vector.load %arg14[%c0_40, %c0_41] : memref<36x84xf32, #tpu.memory_space<vmem>>, vector<28x84xf32>
    %c0_42 = arith.constant 0 : index
    %c0_43 = arith.constant 0 : index
    %c0_44 = arith.constant 0 : index
    %44 = vector.load %arg4[%c0_42, %c0_43, %c0_44] : memref<5x84x160xf32, #tpu.memory_space<vmem>>, vector<1x84x160xf32>
    %45 = vector.shape_cast %44 : vector<1x84x160xf32> to vector<84x160xf32>
    %cst_45 = arith.constant dense<0.000000e+00> : vector<28x160xf32>
    %46 = tpu.matmul %43, %45, %cst_45 {dimension_numbers = #tpu.dot_dimension_numbers<[1], [0], [0], [1], [0, 0, 1, 1], [], []>} : vector<28x84xf32>, vector<84x160xf32>, vector<28x160xf32> -> vector<28x160xf32>
    %c1_46 = arith.constant 1 : index
    %c0_47 = arith.constant 0 : index
    %47 = vector.load %arg14[%c1_46, %c0_47] : memref<36x84xf32, #tpu.memory_space<vmem>>, vector<28x84xf32>
    %c1_48 = arith.constant 1 : index
    %c0_49 = arith.constant 0 : index
    %c0_50 = arith.constant 0 : index
    %48 = vector.load %arg4[%c1_48, %c0_49, %c0_50] : memref<5x84x160xf32, #tpu.memory_space<vmem>>, vector<1x84x160xf32>
    %49 = vector.shape_cast %48 : vector<1x84x160xf32> to vector<84x160xf32>
    %cst_51 = arith.constant dense<0.000000e+00> : vector<28x160xf32>
    %50 = tpu.matmul %47, %49, %cst_51 {dimension_numbers = #tpu.dot_dimension_numbers<[1], [0], [0], [1], [0, 0, 1, 1], [], []>} : vector<28x84xf32>, vector<84x160xf32>, vector<28x160xf32> -> vector<28x160xf32>
    %51 = arith.addf %46, %50 : vector<28x160xf32>
    %c2_52 = arith.constant 2 : index
    %c0_53 = arith.constant 0 : index
    %52 = vector.load %arg14[%c2_52, %c0_53] : memref<36x84xf32, #tpu.memory_space<vmem>>, vector<28x84xf32>
    %c2_54 = arith.constant 2 : index
    %c0_55 = arith.constant 0 : index
    %c0_56 = arith.constant 0 : index
    %53 = vector.load %arg4[%c2_54, %c0_55, %c0_56] : memref<5x84x160xf32, #tpu.memory_space<vmem>>, vector<1x84x160xf32>
    %54 = vector.shape_cast %53 : vector<1x84x160xf32> to vector<84x160xf32>
    %cst_57 = arith.constant dense<0.000000e+00> : vector<28x160xf32>
    %55 = tpu.matmul %52, %54, %cst_57 {dimension_numbers = #tpu.dot_dimension_numbers<[1], [0], [0], [1], [0, 0, 1, 1], [], []>} : vector<28x84xf32>, vector<84x160xf32>, vector<28x160xf32> -> vector<28x160xf32>
    %56 = arith.addf %51, %55 : vector<28x160xf32>
    %c3_58 = arith.constant 3 : index
    %c0_59 = arith.constant 0 : index
    %57 = vector.load %arg14[%c3_58, %c0_59] : memref<36x84xf32, #tpu.memory_space<vmem>>, vector<28x84xf32>
    %c3_60 = arith.constant 3 : index
    %c0_61 = arith.constant 0 : index
    %c0_62 = arith.constant 0 : index
    %58 = vector.load %arg4[%c3_60, %c0_61, %c0_62] : memref<5x84x160xf32, #tpu.memory_space<vmem>>, vector<1x84x160xf32>
    %59 = vector.shape_cast %58 : vector<1x84x160xf32> to vector<84x160xf32>
    %cst_63 = arith.constant dense<0.000000e+00> : vector<28x160xf32>
    %60 = tpu.matmul %57, %59, %cst_63 {dimension_numbers = #tpu.dot_dimension_numbers<[1], [0], [0], [1], [0, 0, 1, 1], [], []>} : vector<28x84xf32>, vector<84x160xf32>, vector<28x160xf32> -> vector<28x160xf32>
    %61 = arith.addf %56, %60 : vector<28x160xf32>
    %c4_64 = arith.constant 4 : index
    %c0_65 = arith.constant 0 : index
    %62 = vector.load %arg14[%c4_64, %c0_65] : memref<36x84xf32, #tpu.memory_space<vmem>>, vector<28x84xf32>
    %c4_66 = arith.constant 4 : index
    %c0_67 = arith.constant 0 : index
    %c0_68 = arith.constant 0 : index
    %63 = vector.load %arg4[%c4_66, %c0_67, %c0_68] : memref<5x84x160xf32, #tpu.memory_space<vmem>>, vector<1x84x160xf32>
    %64 = vector.shape_cast %63 : vector<1x84x160xf32> to vector<84x160xf32>
    %cst_69 = arith.constant dense<0.000000e+00> : vector<28x160xf32>
    %65 = tpu.matmul %62, %64, %cst_69 {dimension_numbers = #tpu.dot_dimension_numbers<[1], [0], [0], [1], [0, 0, 1, 1], [], []>} : vector<28x84xf32>, vector<84x160xf32>, vector<28x160xf32> -> vector<28x160xf32>
    %66 = arith.addf %61, %65 : vector<28x160xf32>
    %c0_70 = arith.constant 0 : index
    %c0_71 = arith.constant 0 : index
    %67 = vector.load %arg5[%c0_70, %c0_71] : memref<1x160xf32, #tpu.memory_space<vmem>>, vector<1x160xf32>
    %68 = vector.broadcast %67 : vector<1x160xf32> to vector<28x160xf32>
    %69 = arith.addf %66, %68 : vector<28x160xf32>
    %cst_72 = arith.constant 0.000000e+00 : f32
    %70 = vector.broadcast %cst_72 : f32 to vector<28x160xf32>
    %71 = arith.maximumf %69, %70 : vector<28x160xf32>
    %72 = vector.extract_strided_slice %71 {offsets = [0, 0], sizes = [28, 80], strides = [1, 1]} : vector<28x160xf32> to vector<28x80xf32>
    %73 = vector.extract_strided_slice %71 {offsets = [0, 80], sizes = [28, 80], strides = [1, 1]} : vector<28x160xf32> to vector<28x80xf32>
    %74 = arith.maximumf %72, %73 : vector<28x80xf32>
    %c0_73 = arith.constant 0 : index
    %c0_74 = arith.constant 0 : index
    %75 = vector.load %arg15[%c0_73, %c0_74] : memref<28x80xf32, #tpu.memory_space<vmem>>, vector<28x80xf32>
    tpu.vector_store %arg15[%c0_73, %c0_74], %74 {strides = array<i32>} : memref<28x80xf32, #tpu.memory_space<vmem>>, vector<28x80xf32>,
    %c0_75 = arith.constant 0 : index
    %c0_76 = arith.constant 0 : index
    %76 = tpu.strided_load %arg15[%c0_75, %c0_76] {strides = array<i32: 14, 1>} : memref<28x80xf32, #tpu.memory_space<vmem>>, vector<2x80xf32>
    %c1_77 = arith.constant 1 : index
    %c0_78 = arith.constant 0 : index
    %77 = tpu.strided_load %arg15[%c1_77, %c0_78] {strides = array<i32: 14, 1>} : memref<28x80xf32, #tpu.memory_space<vmem>>, vector<2x80xf32>
    %78 = arith.maximumf %76, %77 : vector<2x80xf32>
    %c0_79 = arith.constant 0 : index
    %c0_80 = arith.constant 0 : index
    %79 = vector.load %arg16[%c0_79, %c0_80] : memref<2x400xf32, #tpu.memory_space<vmem>>, vector<2x80xf32>
    tpu.vector_store %arg16[%c0_79, %c0_80], %78 {strides = array<i32>} : memref<2x400xf32, #tpu.memory_space<vmem>>, vector<2x80xf32>,
    %c2_81 = arith.constant 2 : index
    %c0_82 = arith.constant 0 : index
    %80 = tpu.strided_load %arg15[%c2_81, %c0_82] {strides = array<i32: 14, 1>} : memref<28x80xf32, #tpu.memory_space<vmem>>, vector<2x80xf32>
    %c3_83 = arith.constant 3 : index
    %c0_84 = arith.constant 0 : index
    %81 = tpu.strided_load %arg15[%c3_83, %c0_84] {strides = array<i32: 14, 1>} : memref<28x80xf32, #tpu.memory_space<vmem>>, vector<2x80xf32>
    %82 = arith.maximumf %80, %81 : vector<2x80xf32>
    %c0_85 = arith.constant 0 : index
    %c80 = arith.constant 80 : index
    %83 = vector.load %arg16[%c0_85, %c80] : memref<2x400xf32, #tpu.memory_space<vmem>>, vector<2x80xf32>
    tpu.vector_store %arg16[%c0_85, %c80], %82 {strides = array<i32>} : memref<2x400xf32, #tpu.memory_space<vmem>>, vector<2x80xf32>,
    %c4_86 = arith.constant 4 : index
    %c0_87 = arith.constant 0 : index
    %84 = tpu.strided_load %arg15[%c4_86, %c0_87] {strides = array<i32: 14, 1>} : memref<28x80xf32, #tpu.memory_space<vmem>>, vector<2x80xf32>
    %c5 = arith.constant 5 : index
    %c0_88 = arith.constant 0 : index
    %85 = tpu.strided_load %arg15[%c5, %c0_88] {strides = array<i32: 14, 1>} : memref<28x80xf32, #tpu.memory_space<vmem>>, vector<2x80xf32>
    %86 = arith.maximumf %84, %85 : vector<2x80xf32>
    %c0_89 = arith.constant 0 : index
    %c160 = arith.constant 160 : index
    %87 = vector.load %arg16[%c0_89, %c160] : memref<2x400xf32, #tpu.memory_space<vmem>>, vector<2x80xf32>
    tpu.vector_store %arg16[%c0_89, %c160], %86 {strides = array<i32>} : memref<2x400xf32, #tpu.memory_space<vmem>>, vector<2x80xf32>,
    %c6 = arith.constant 6 : index
    %c0_90 = arith.constant 0 : index
    %88 = tpu.strided_load %arg15[%c6, %c0_90] {strides = array<i32: 14, 1>} : memref<28x80xf32, #tpu.memory_space<vmem>>, vector<2x80xf32>
    %c7 = arith.constant 7 : index
    %c0_91 = arith.constant 0 : index
    %89 = tpu.strided_load %arg15[%c7, %c0_91] {strides = array<i32: 14, 1>} : memref<28x80xf32, #tpu.memory_space<vmem>>, vector<2x80xf32>
    %90 = arith.maximumf %88, %89 : vector<2x80xf32>
    %c0_92 = arith.constant 0 : index
    %c240 = arith.constant 240 : index
    %91 = vector.load %arg16[%c0_92, %c240] : memref<2x400xf32, #tpu.memory_space<vmem>>, vector<2x80xf32>
    tpu.vector_store %arg16[%c0_92, %c240], %90 {strides = array<i32>} : memref<2x400xf32, #tpu.memory_space<vmem>>, vector<2x80xf32>,
    %c8 = arith.constant 8 : index
    %c0_93 = arith.constant 0 : index
    %92 = tpu.strided_load %arg15[%c8, %c0_93] {strides = array<i32: 14, 1>} : memref<28x80xf32, #tpu.memory_space<vmem>>, vector<2x80xf32>
    %c9 = arith.constant 9 : index
    %c0_94 = arith.constant 0 : index
    %93 = tpu.strided_load %arg15[%c9, %c0_94] {strides = array<i32: 14, 1>} : memref<28x80xf32, #tpu.memory_space<vmem>>, vector<2x80xf32>
    %94 = arith.maximumf %92, %93 : vector<2x80xf32>
    %c0_95 = arith.constant 0 : index
    %c320 = arith.constant 320 : index
    %95 = vector.load %arg16[%c0_95, %c320] : memref<2x400xf32, #tpu.memory_space<vmem>>, vector<2x80xf32>
    tpu.vector_store %arg16[%c0_95, %c320], %94 {strides = array<i32>} : memref<2x400xf32, #tpu.memory_space<vmem>>, vector<2x80xf32>,
    %c0_96 = arith.constant 0 : index
    %c0_97 = arith.constant 0 : index
    %96 = vector.load %arg16[%c0_96, %c0_97] : memref<2x400xf32, #tpu.memory_space<vmem>>, vector<2x400xf32>
    %c0_98 = arith.constant 0 : index
    %c0_99 = arith.constant 0 : index
    %97 = vector.load %arg6[%c0_98, %c0_99] : memref<400x120xf32, #tpu.memory_space<vmem>>, vector<400x120xf32>
    %cst_100 = arith.constant dense<0.000000e+00> : vector<2x120xf32>
    %98 = tpu.matmul %96, %97, %cst_100 {dimension_numbers = #tpu.dot_dimension_numbers<[1], [0], [0], [1], [0, 0, 1, 1], [], []>} : vector<2x400xf32>, vector<400x120xf32>, vector<2x120xf32> -> vector<2x120xf32>
    %c0_101 = arith.constant 0 : index
    %c0_102 = arith.constant 0 : index
    %99 = vector.load %arg7[%c0_101, %c0_102] : memref<1x120xf32, #tpu.memory_space<vmem>>, vector<1x120xf32>
    %100 = vector.broadcast %99 : vector<1x120xf32> to vector<2x120xf32>
    %101 = arith.addf %98, %100 : vector<2x120xf32>
    %cst_103 = arith.constant 0.000000e+00 : f32
    %102 = vector.broadcast %cst_103 : f32 to vector<2x120xf32>
    %103 = arith.maximumf %101, %102 : vector<2x120xf32>
    %c0_104 = arith.constant 0 : index
    %c0_105 = arith.constant 0 : index
    %104 = vector.load %arg8[%c0_104, %c0_105] : memref<120x84xf32, #tpu.memory_space<vmem>>, vector<120x84xf32>
    %cst_106 = arith.constant dense<0.000000e+00> : vector<2x84xf32>
    %105 = tpu.matmul %103, %104, %cst_106 {dimension_numbers = #tpu.dot_dimension_numbers<[1], [0], [0], [1], [0, 0, 1, 1], [], []>} : vector<2x120xf32>, vector<120x84xf32>, vector<2x84xf32> -> vector<2x84xf32>
    %c0_107 = arith.constant 0 : index
    %c0_108 = arith.constant 0 : index
    %106 = vector.load %arg9[%c0_107, %c0_108] : memref<1x84xf32, #tpu.memory_space<vmem>>, vector<1x84xf32>
    %107 = vector.broadcast %106 : vector<1x84xf32> to vector<2x84xf32>
    %108 = arith.addf %105, %107 : vector<2x84xf32>
    %cst_109 = arith.constant 0.000000e+00 : f32
    %109 = vector.broadcast %cst_109 : f32 to vector<2x84xf32>
    %110 = arith.maximumf %108, %109 : vector<2x84xf32>
    %c0_110 = arith.constant 0 : index
    %c0_111 = arith.constant 0 : index
    %111 = vector.load %arg10[%c0_110, %c0_111] : memref<84x10xf32, #tpu.memory_space<vmem>>, vector<84x10xf32>
    %cst_112 = arith.constant dense<0.000000e+00> : vector<2x10xf32>
    %112 = tpu.matmul %110, %111, %cst_112 {dimension_numbers = #tpu.dot_dimension_numbers<[1], [0], [0], [1], [0, 0, 1, 1], [], []>} : vector<2x84xf32>, vector<84x10xf32>, vector<2x10xf32> -> vector<2x10xf32>
    %c0_113 = arith.constant 0 : index
    %c0_114 = arith.constant 0 : index
    %113 = vector.load %arg11[%c0_113, %c0_114] : memref<1x10xf32, #tpu.memory_space<vmem>>, vector<1x10xf32>
    %114 = vector.broadcast %113 : vector<1x10xf32> to vector<2x10xf32>
    %115 = arith.addf %112, %114 : vector<2x10xf32>
    %c0_115 = arith.constant 0 : index
    %c0_116 = arith.constant 0 : index
    %116 = vector.load %arg12[%c0_115, %c0_116] : memref<2x10xf32, #tpu.memory_space<vmem>>, vector<2x10xf32>
    tpu.vector_store %arg12[%c0_115, %c0_116], %115 {strides = array<i32>} : memref<2x10xf32, #tpu.memory_space<vmem>>, vector<2x10xf32>,
    return
  }
  func.func @transform_0(%arg0: i32) -> (i32, i32) {
    %c0_i32 = arith.constant 0 : i32
    %c0_i32_0 = arith.constant 0 : i32
    return %arg0, %c0_i32 : i32, i32
  }
  func.func @transform_1(%arg0: i32) -> (i32, i32, i32) {
    %c0_i32 = arith.constant 0 : i32
    %c0_i32_0 = arith.constant 0 : i32
    %c0_i32_1 = arith.constant 0 : i32
    %c0_i32_2 = arith.constant 0 : i32
    return %c0_i32, %c0_i32_0, %c0_i32_1 : i32, i32, i32
  }
  func.func @transform_2(%arg0: i32) -> (i32, i32) {
    %c0_i32 = arith.constant 0 : i32
    %c0_i32_0 = arith.constant 0 : i32
    %c0_i32_1 = arith.constant 0 : i32
    return %c0_i32, %c0_i32_0 : i32, i32
  }
  func.func @transform_3(%arg0: i32) -> (i32, i32, i32) {
    %c0_i32 = arith.constant 0 : i32
    %c0_i32_0 = arith.constant 0 : i32
    %c0_i32_1 = arith.constant 0 : i32
    %c0_i32_2 = arith.constant 0 : i32
    return %c0_i32, %c0_i32_0, %c0_i32_1 : i32, i32, i32
  }
  func.func @transform_4(%arg0: i32) -> (i32, i32) {
    %c0_i32 = arith.constant 0 : i32
    %c0_i32_0 = arith.constant 0 : i32
    %c0_i32_1 = arith.constant 0 : i32
    return %c0_i32, %c0_i32_0 : i32, i32
  }
  func.func @transform_5(%arg0: i32) -> (i32, i32) {
    %c0_i32 = arith.constant 0 : i32
    %c0_i32_0 = arith.constant 0 : i32
    %c0_i32_1 = arith.constant 0 : i32
    return %c0_i32, %c0_i32_0 : i32, i32
  }
  func.func @transform_6(%arg0: i32) -> (i32, i32) {
    %c0_i32 = arith.constant 0 : i32
    %c0_i32_0 = arith.constant 0 : i32
    %c0_i32_1 = arith.constant 0 : i32
    return %c0_i32, %c0_i32_0 : i32, i32
  }
  func.func @transform_7(%arg0: i32) -> (i32, i32) {
    %c0_i32 = arith.constant 0 : i32
    %c0_i32_0 = arith.constant 0 : i32
    %c0_i32_1 = arith.constant 0 : i32
    return %c0_i32, %c0_i32_0 : i32, i32
  }
  func.func @transform_8(%arg0: i32) -> (i32, i32) {
    %c0_i32 = arith.constant 0 : i32
    %c0_i32_0 = arith.constant 0 : i32
    %c0_i32_1 = arith.constant 0 : i32
    return %c0_i32, %c0_i32_0 : i32, i32
  }
  func.func @transform_9(%arg0: i32) -> (i32, i32) {
    %c0_i32 = arith.constant 0 : i32
    %c0_i32_0 = arith.constant 0 : i32
    %c0_i32_1 = arith.constant 0 : i32
    return %c0_i32, %c0_i32_0 : i32, i32
  }
  func.func @transform_10(%arg0: i32) -> (i32, i32) {
    %c0_i32 = arith.constant 0 : i32
    %c0_i32_0 = arith.constant 0 : i32
    %c0_i32_1 = arith.constant 0 : i32
    return %c0_i32, %c0_i32_0 : i32, i32
  }
  func.func @transform_11(%arg0: i32) -> (i32, i32) {
    %c0_i32 = arith.constant 0 : i32
    %c0_i32_0 = arith.constant 0 : i32
    return %arg0, %c0_i32 : i32, i32
  }
}

</mosaic_0001>

<bundles_post_ra>
// kernel: tile.13
= control target key start
LH: loop header
LB: loop body
LE: loop exit
PB: predicated region body
PF: predicated region fallthrough
CT: control target
= control target key end

     0   :  { %s40_s0 = inlined_call_operand.vmem [shape: f32[6], index: 0, kind: input, shape index: {}]   ;;  %s41_s1 = inlined_call_operand.vmem [shape: f32[28,6], index: 1, kind: output, shape index: {}]  }
   0x1   :  { %v4_v0 = vld [vmem:[%s40_s0] ss:$0 sm:$0xff] }
   0x2   :  { %5 = vst [vmem:[%s41_s1] sm:$0xff] %v4_v0  ;;  %12 = vst [vmem:[%s41_s1 + $0x8] sm:$0xff] %v4_v0 }
   0x3   :  { %13 = vst [vmem:[%s41_s1 + $0x10] sm:$0xff] %v4_v0  ;;  %14 = vst [vmem:[%s41_s1 + $0x18] sm:$0xff] %v4_v0 }

// kernel: tile.14
= control target key start
LH: loop header
LB: loop body
LE: loop exit
PB: predicated region body
PF: predicated region fallthrough
CT: control target
= control target key end

     0   :  { %vm9_vm0 = vcmask 15360   ;;  %s250_s12 = smov 126   ;;  %s251_s13 = smov 114   ;;  %vm3_vm1 = vcmask 48128   ;;  %vm13_vm2 = vcmask 31744   ;;  %vm16_vm3 = vcmask 1048560   ;;  %s380_s0 = inlined_call_operand.vmem [shape: f32[28,6], index: 0, kind: input, shape index: {}]   ;;  %s381_s1 = inlined_call_operand.vmem [shape: f32[1,168], index: 1, kind: output, shape index: {}]  }
   0x1   :  { %v194_v0 = vld [vmem:[%s380_s0 + $0x15] sm:$0x1]   ;;  %v197_v3 = vld [vmem:[%s380_s0 + $0x13] sm:$0x1]   ;;  %v196_v4 = vld [vmem:[%s380_s0 + $0x14] sm:$0x1]  }
   0x2   :  { %v195_v1 = vld [vmem:[%s380_s0 + $0x15] sm:$0x1]   ;;  %26 = vrot.lane.b32.xlu1 %v197_v3, %s251_s13  ;;  %v198_v5 = vld [vmem:[%s380_s0 + $0x12] sm:$0x1]   ;;  %s252_s18 = smov 120   ;;  %s253_s19 = smov 108  }
   0x3   :  { %v10_v2 = vsel %vm9_vm0, %v195_v1, %v194_v0  ;;  %v199_v6 = vld [vmem:[%s380_s0 + $0x11] sm:$0x1]   ;;  %v200_v7 = vld [vmem:[%s380_s0 + $0x10] sm:$0x1]   ;;  %s254_s24 = smov 102   ;;  %s255_s25 = smov 96  }
   0x4   :  { %11 = vrot.lane.b32.xlu0 %v10_v2, %s250_s12  ;;  %v201_v8 = vld [vmem:[%s380_s0 + $0xf] sm:$0x1]   ;;  %v202_v9 = vld [vmem:[%s380_s0 + $0xe] sm:$0x1]   ;;  %s256_s30 = smov 90   ;;  %s257_s2 = smov 84  }
   0x5   :  { %v2_v10 = vld [vmem:[%s380_s0] sm:$0x1]   ;;  %v203_v11 = vld [vmem:[%s380_s0 + $0xd] sm:$0x1]   ;;  %v204_v12 = vld [vmem:[%s380_s0 + $0xc] sm:$0x1]  }
   0x6   :  { %32 = vrot.lane.b32.xlu1 %v198_v5, %s253_s19  ;;  %4 = vst.msk [vmem:[#allocation0] sm:$0x1] %vm3_vm1, %v2_v10   ;;  %s258_s9 = smov 78   ;;  %s259_s10 = smov 72   ;;  %v205_v13 = vld [vmem:[%s380_s0 + $0xb] sm:$0x1]  }
   0x7   :  { %v206_v14 = vld [vmem:[%s380_s0 + $0xa] sm:$0x1]   ;;  %s260_s15 = smov 66   ;;  %s261_s16 = smov 60   ;;  %v207_v15 = vld [vmem:[%s380_s0 + $0x9] sm:$0x1]  }
   0x8   :  { %20 = vrot.lane.b32.xlu0 %v196_v4, %s252_s18  ;;  %v208_v16 = vld [vmem:[%s380_s0 + $0x8] sm:$0x1]   ;;  %s262_s21 = smov 54   ;;  %s263_s22 = smov 48   ;;  %v209_v17 = vld [vmem:[%s380_s0 + $0x7] sm:$0x1]  }
   0x9   :  { %v210_v18 = vld [vmem:[%s380_s0 + $0x6] sm:$0x1]   ;;  %s264_s27 = smov 42   ;;  %s265_s28 = smov 36   ;;  %v211_v19 = vld [vmem:[%s380_s0 + $0x1b] sm:$0x1]  }
   0xa   :  { %44 = vrot.lane.b32.xlu1 %v200_v7, %s255_s25  ;;  %v212_v20 = vld [vmem:[%s380_s0 + $0x5] sm:$0x1]   ;;  %s266_s4 = smov 34   ;;  %s267_s5 = smov 30   ;;  %v213_v21 = vld [vmem:[%s380_s0 + $0x1a] sm:$0x1]  }
   0xb   :  { %v214_v22 = vld [vmem:[%s380_s0 + $0x4] sm:$0x1]   ;;  %s269_s11 = smov 24   ;;  %v215_v23 = vld [vmem:[%s380_s0 + $0x19] sm:$0x1]   ;;  %s271_s17 = smov 18  }
   0xc   :  { %38 = vrot.lane.b32.xlu0 %v199_v6, %s254_s24  ;;  %v216_v24 = vld [vmem:[%s380_s0 + $0x3] sm:$0x1]   ;;  %v217_v25 = vld [vmem:[%s380_s0 + $0x18] sm:$0x1]   ;;  %v218_v26 = vld [vmem:[%s380_s0 + $0x2] sm:$0x1]  }
   0xd   :  { %s273_s23 = smov 12   ;;  %v219_v27 = vld [vmem:[%s380_s0 + $0x17] sm:$0x1]   ;;  %v220_v28 = vld [vmem:[%s380_s0 + $0x1] sm:$0x1]   ;;  %s275_s29 = smov 6  }
   0xe   :  { %56 = vrot.lane.b32.xlu1 %v202_v9, %s257_s2  ;;  %v221_v29 = vld [vmem:[%s380_s0 + $0x16] sm:$0x1]   ;;  %s276_s0 = smov 4   ;;  %vm22_vm4 = vcmask 1032128   ;;  %vm28_vm5 = vcmask 982928   ;;  %vm34_vm6 = vcmask 933728  }
   0xf   :  { %vm40_vm7 = vcmask 884528   ;;  %vm46_vm8 = vcmask 835328   ;;  %vm52_vm9 = vcmask 786128   ;;  %vm58_vm10 = vcmask 736928  }
  0x10   :  { %50 = vrot.lane.b32.xlu0 %v201_v8, %s256_s30  ;;  %vm64_vm11 = vcmask 687728   ;;  %vm70_vm12 = vcmask 638528   ;;  %vm76_vm13 = vcmask 589328   ;;  %vm82_vm14 = vcmask 540128  }
  0x11   :  { %vm88_vm15 = vcmask 490928   ;;  %vm94_vm0 = vcmask 441728   ;;  %vm100_vm1 = vcmask 392528  }
  0x12   :  { %68 = vrot.lane.b32.xlu1 %v204_v12, %s259_s10  ;;  %s268_s10 = smov 28  }
  0x14   :  { %62 = vrot.lane.b32.xlu0 %v203_v11, %s258_s9 }
  0x16   :  { %80 = vrot.lane.b32.xlu1 %v206_v14, %s261_s16  ;;  %s270_s16 = smov 22  }
  0x18   :  { %74 = vrot.lane.b32.xlu0 %v205_v13, %s260_s15 }
  0x1a   :  { %92 = vrot.lane.b32.xlu1 %v208_v16, %s263_s22  ;;  %s272_s22 = smov 16  }
  0x1c   :  { %86 = vrot.lane.b32.xlu0 %v207_v15, %s262_s21 }
  0x1e   :  { %104 = vrot.lane.b32.xlu1 %v210_v18, %s265_s28  ;;  %s274_s28 = smov 10  }
  0x20   :  { %98 = vrot.lane.b32.xlu0 %v209_v17, %s264_s27 }
  0x22   :  { %117 = vrot.lane.b32.xlu1 %v212_v20, %s267_s5 }
  0x24   :  { %110 = vrot.lane.b32.xlu0 %v211_v19, %s266_s4 }
  0x26   :  { %130 = vrot.lane.b32.xlu1 %v214_v22, %s269_s11 }
  0x28   :  { %123 = vrot.lane.b32.xlu0 %v213_v21, %s268_s10 }
  0x2a   :  { %143 = vrot.lane.b32.xlu1 %v216_v24, %s271_s17 }
  0x2c   :  { %136 = vrot.lane.b32.xlu0 %v215_v23, %s270_s16 }
  0x2e   :  { %156 = vrot.lane.b32.xlu1 %v218_v26, %s273_s23 }
  0x30   :  { %149 = vrot.lane.b32.xlu0 %v217_v25, %s272_s22 }
  0x32   :  { %169 = vrot.lane.b32.xlu1 %v220_v28, %s275_s29 }
  0x34   :  { %162 = vrot.lane.b32.xlu0 %v219_v27, %s274_s28 }
  0x38   :  { %175 = vrot.lane.b32.xlu0 %v221_v29, %s276_s0 }
  0x74   :  { %v27_v31 = vpop.permute.xlu1 %26  }
  0x76   :  { %v12_v30 = vpop.permute.xlu0 %11  }
  0x77   :  { %15 = vst.msk [vmem:[#allocation0 + $0x8] sm:$0x1] %vm13_vm2, %v12_v30   ;;  %vm106_vm2 = vcmask 343328  }
  0x78   :  { %17 = vst.msk [vmem:[#allocation0] sm:$0x1] %vm16_vm3, %v12_v30   ;;  %v33_v33 = vpop.permute.xlu1 %32   ;;  %vm112_vm3 = vcmask 326928  }
  0x7a   :  { %v21_v32 = vpop.permute.xlu0 %20  }
  0x7b   :  { %23 = vst.msk [vmem:[#allocation0] sm:$0x1] %vm22_vm4, %v21_v32   ;;  %vm119_vm4 = vcmask 294128  }
  0x7c   :  { %29 = vst.msk [vmem:[#allocation0] sm:$0x1] %vm28_vm5, %v27_v31   ;;  %v45_v35 = vpop.permute.xlu1 %44   ;;  %vm125_vm5 = vcmask 277728  }
  0x7d   :  { %35 = vst.msk [vmem:[#allocation0] sm:$0x1] %vm34_vm6, %v33_v33   ;;  %vm132_vm6 = vcmask 244928  }
  0x7e   :  { %v39_v34 = vpop.permute.xlu0 %38  }
  0x7f   :  { %41 = vst.msk [vmem:[#allocation0] sm:$0x1] %vm40_vm7, %v39_v34   ;;  %vm138_vm7 = vcmask 228528  }
  0x80   :  { %47 = vst.msk [vmem:[#allocation0] sm:$0x1] %vm46_vm8, %v45_v35   ;;  %v57_v37 = vpop.permute.xlu1 %56   ;;  %vm145_vm8 = vcmask 195728  }
  0x82   :  { %v51_v36 = vpop.permute.xlu0 %50  }
  0x83   :  { %53 = vst.msk [vmem:[#allocation0] sm:$0x1] %vm52_vm9, %v51_v36   ;;  %vm151_vm9 = vcmask 179328  }
  0x84   :  { %59 = vst.msk [vmem:[#allocation0] sm:$0x1] %vm58_vm10, %v57_v37   ;;  %v69_v39 = vpop.permute.xlu1 %68   ;;  %vm158_vm10 = vcmask 146528  }
  0x86   :  { %v63_v38 = vpop.permute.xlu0 %62  }
  0x87   :  { %65 = vst.msk [vmem:[#allocation0] sm:$0x1] %vm64_vm11, %v63_v38   ;;  %vm164_vm11 = vcmask 130128  }
  0x88   :  { %71 = vst.msk [vmem:[#allocation0] sm:$0x1] %vm70_vm12, %v69_v39   ;;  %v81_v41 = vpop.permute.xlu1 %80   ;;  %vm171_vm12 = vcmask 97328  }
  0x8a   :  { %v75_v40 = vpop.permute.xlu0 %74  }
  0x8b   :  { %77 = vst.msk [vmem:[#allocation0] sm:$0x1] %vm76_vm13, %v75_v40   ;;  %vm177_vm13 = vcmask 80928  }
  0x8c   :  { %83 = vst.msk [vmem:[#allocation0] sm:$0x1] %vm82_vm14, %v81_v41   ;;  %v93_v43 = vpop.permute.xlu1 %92  }
  0x8e   :  { %v87_v42 = vpop.permute.xlu0 %86  }
  0x8f   :  { %89 = vst.msk [vmem:[#allocation0] sm:$0x1] %vm88_vm15, %v87_v42  }
  0x90   :  { %95 = vst.msk [vmem:[#allocation0] sm:$0x1] %vm94_vm0, %v93_v43   ;;  %v105_v45 = vpop.permute.xlu1 %104  }
  0x92   :  { %v99_v44 = vpop.permute.xlu0 %98  }
  0x93   :  { %101 = vst.msk [vmem:[#allocation0] sm:$0x1] %vm100_vm1, %v99_v44  }
  0x94   :  { %107 = vst.msk [vmem:[#allocation0] sm:$0x1] %vm106_vm2, %v105_v45   ;;  %v118_v47 = vpop.permute.xlu1 %117  }
  0x95   :  { %120 = vst.msk [vmem:[#allocation0] sm:$0x1] %vm119_vm4, %v118_v47  }
  0x96   :  { %v111_v46 = vpop.permute.xlu0 %110  }
  0x97   :  { %114 = vst.msk [vmem:[#allocation0 + $0x8] sm:$0x1] %vm112_vm3, %v111_v46  }
  0x98   :  { %v131_v49 = vpop.permute.xlu1 %130  }
  0x99   :  { %133 = vst.msk [vmem:[#allocation0] sm:$0x1] %vm132_vm6, %v131_v49  }
  0x9a   :  { %v124_v48 = vpop.permute.xlu0 %123  }
  0x9b   :  { %127 = vst.msk [vmem:[#allocation0 + $0x8] sm:$0x1] %vm125_vm5, %v124_v48  }
  0x9c   :  { %v144_v51 = vpop.permute.xlu1 %143  }
  0x9d   :  { %146 = vst.msk [vmem:[#allocation0] sm:$0x1] %vm145_vm8, %v144_v51  }
  0x9e   :  { %v137_v50 = vpop.permute.xlu0 %136  }
  0x9f   :  { %140 = vst.msk [vmem:[#allocation0 + $0x8] sm:$0x1] %vm138_vm7, %v137_v50  }
  0xa0   :  { %v157_v53 = vpop.permute.xlu1 %156  }
  0xa1   :  { %159 = vst.msk [vmem:[#allocation0] sm:$0x1] %vm158_vm10, %v157_v53  }
  0xa2   :  { %v150_v52 = vpop.permute.xlu0 %149  }
  0xa3   :  { %153 = vst.msk [vmem:[#allocation0 + $0x8] sm:$0x1] %vm151_vm9, %v150_v52  }
  0xa4   :  { %v170_v55 = vpop.permute.xlu1 %169  }
  0xa5   :  { %172 = vst.msk [vmem:[#allocation0] sm:$0x1] %vm171_vm12, %v170_v55  }
  0xa6   :  { %v163_v54 = vpop.permute.xlu0 %162  }
  0xa7   :  { %166 = vst.msk [vmem:[#allocation0 + $0x8] sm:$0x1] %vm164_vm11, %v163_v54  }
  0xaa   :  { %v176_v56 = vpop.permute.xlu0 %175  }
  0xab   :  { %179 = vst.msk [vmem:[#allocation0 + $0x8] sm:$0x1] %vm177_vm13, %v176_v56  }
  0xac   :  { %v184_v57 = vld [vmem:[#allocation0] sm:$0x1] }
  0xad   :  { %187 = vst [vmem:[%s381_s1] sm:$0x1] %v184_v57 }
  0xb2   :  { %v189_v58 = vld [vmem:[#allocation0 + $0x8] sm:$0x1] }
  0xb3   :  { %222 = vst [vmem:[%s381_s1 + $0x1] sm:$0x1] %v189_v58 }

// kernel: tile.18
= control target key start
LH: loop header
LB: loop body
LE: loop exit
PB: predicated region body
PF: predicated region fallthrough
CT: control target
= control target key end

     0   :  { %s28_s0 = inlined_call_operand.vmem [shape: f32[16], index: 0, kind: input, shape index: {}]   ;;  %s29_s1 = inlined_call_operand.vmem [shape: f32[10,16], index: 1, kind: output, shape index: {}]  }
   0x1   :  { %v4_v0 = vld [vmem:[%s28_s0] ss:$0 sm:$0xff] }
   0x2   :  { %5 = vst [vmem:[%s29_s1] sm:$0xff] %v4_v0  ;;  %8 = vst [vmem:[%s29_s1 + $0x8] sm:$0xff] %v4_v0 }

// kernel: tile.19
= control target key start
LH: loop header
LB: loop body
LE: loop exit
PB: predicated region body
PF: predicated region fallthrough
CT: control target
= control target key end

     0   :  { %s78_s10 = smov 112   ;;  %s79_s11 = smov 80   ;;  %vm4_vm0 = vcmask 130048   ;;  %vm10_vm1 = vcmask 1048448   ;;  %vm16_vm2 = vcmask 917248   ;;  %vm22_vm3 = vcmask 786048   ;;  %s125_s0 = inlined_call_operand.vmem [shape: f32[10,16], index: 0, kind: input, shape index: {}]   ;;  %s126_s1 = inlined_call_operand.vmem [shape: f32[1,160], index: 1, kind: output, shape index: {}]  }
   0x1   :  { %v63_v0 = vld [vmem:[%s125_s0 + $0x7] sm:$0x1]   ;;  %v65_v1 = vld [vmem:[%s125_s0 + $0x5] sm:$0x1]   ;;  %v64_v2 = vld [vmem:[%s125_s0 + $0x6] sm:$0x1]  }
   0x2   :  { %8 = vrot.lane.b32.xlu0 %v63_v0, %s78_s10  ;;  %20 = vrot.lane.b32.xlu1 %v65_v1, %s79_s11  ;;  %v66_v3 = vld [vmem:[%s125_s0 + $0x4] sm:$0x1]   ;;  %s2_s16 = smov 3  ;;  %s80_s17 = smov 96   ;;  %v67_v5 = vld [vmem:[%s125_s0 + $0x3] sm:$0x1]  }
   0x3   :  { %s81_s18 = smov 64   ;;  %v3_v4 = vld [vmem:[%s125_s0] ss:$8 sm:%s2_s16]   ;;  %v68_v6 = vld [vmem:[%s125_s0 + $0x2] sm:$0x1]   ;;  %s43_s25 = smov 3 }
   0x4   :  { %5 = vst.msk [vmem:[#allocation0] ss:$8 sm:$0x3] %vm4_vm0, %v3_v4   ;;  %s82_s26 = smov 48   ;;  %s83_s27 = smov 32   ;;  %vm28_vm4 = vcmask 654848  }
   0x5   :  { %v69_v7 = vld [vmem:[%s125_s0 + $0x1] ss:$8 sm:%s43_s25]   ;;  %s84_s0 = smov 16   ;;  %vm34_vm5 = vcmask 523648   ;;  %vm40_vm6 = vcmask 392448   ;;  %vm47_vm7 = vcmask 261248  }
   0x6   :  { %14 = vrot.lane.b32.xlu0 %v64_v2, %s80_s17  ;;  %26 = vrot.lane.b32.xlu1 %v66_v3, %s81_s18 }
   0xa   :  { %32 = vrot.lane.b32.xlu0 %v67_v5, %s82_s26  ;;  %38 = vrot.lane.b32.xlu1 %v68_v6, %s83_s27 }
   0xe   :  { %45 = vrot.lane.b32.xlu0 %v69_v7, %s84_s0 }
  0x74   :  { %v9_v8 = vpop.permute.xlu0 %8   ;;  %v21_v9 = vpop.permute.xlu1 %20  }
  0x75   :  { %11 = vst.msk [vmem:[#allocation0] sm:$0x1] %vm10_vm1, %v9_v8  }
  0x78   :  { %v15_v10 = vpop.permute.xlu0 %14   ;;  %v27_v11 = vpop.permute.xlu1 %26  }
  0x79   :  { %17 = vst.msk [vmem:[#allocation0] sm:$0x1] %vm16_vm2, %v15_v10  }
  0x7a   :  { %23 = vst.msk [vmem:[#allocation0] sm:$0x1] %vm22_vm3, %v21_v9  }
  0x7b   :  { %29 = vst.msk [vmem:[#allocation0] sm:$0x1] %vm28_vm4, %v27_v11  }
  0x7c   :  { %v33_v12 = vpop.permute.xlu0 %32   ;;  %v39_v13 = vpop.permute.xlu1 %38  }
  0x7d   :  { %35 = vst.msk [vmem:[#allocation0] sm:$0x1] %vm34_vm5, %v33_v12  }
  0x7e   :  { %41 = vst.msk [vmem:[#allocation0] sm:$0x1] %vm40_vm6, %v39_v13  }
  0x80   :  { %v46_v14 = vpop.permute.xlu0 %45  }
  0x81   :  { %48 = vst.msk [vmem:[#allocation0] ss:$8 sm:$0x3] %vm47_vm7, %v46_v14  }
  0x88   :  { %v53_v15 = vld [vmem:[#allocation0] sm:$0x1]  ;;  %v58_v16 = vld [vmem:[#allocation0 + $0x8] sm:$0x1] }
  0x89   :  { %56 = vst [vmem:[%s126_s1] sm:$0x1] %v53_v15  ;;  %70 = vst [vmem:[%s126_s1 + $0x1] sm:$0x1] %v58_v16 }

// kernel: lenet_forward.1
= control target key start
LH: loop header
LB: loop body
LE: loop exit
PB: predicated region body
PF: predicated region fallthrough
CT: control target
= control target key end

     0   :  { %vm104_vm0 = vcmask 785408   ;;  %v4407_v50 = vmov 0.0   ;;  %s4395_s0 = inlined_call_operand.vmem [shape: f32[72,96], index: 0, kind: input, shape index: {}]   ;;  %s4396_s1 = inlined_call_operand.vmem [shape: f32[5,96,168], index: 1, kind: input, shape index: {}]   ;;  %s4397_s2 = inlined_call_operand.vmem [shape: f32[1,168], index: 2, kind: input, shape index: {}]   ;;  %s4398_s3 = inlined_call_operand.vmem [shape: f32[5,84,160], index: 3, kind: input, shape index: {}]   ;;  %s4399_s4 = inlined_call_operand.vmem [shape: f32[1,160], index: 4, kind: input, shape index: {}]   ;;  %s4400_s5 = inlined_call_operand.vmem [shape: f32[400,120], index: 5, kind: input, shape index: {}]   ;;  %s4401_s6 = inlined_call_operand.vmem [shape: f32[1,120], index: 6, kind: input, shape index: {}]   ;;  %s4402_s7 = inlined_call_operand.vmem [shape: f32[120,84], index: 7, kind: input, shape index: {}]   ;;  %s4403_s8 = inlined_call_operand.vmem [shape: f32[1,84], index: 8, kind: input, shape index: {}]   ;;  %s4404_s9 = inlined_call_operand.vmem [shape: f32[84,10], index: 9, kind: input, shape index: {}]   ;;  %s4405_s10 = inlined_call_operand.vmem [shape: f32[1,10], index: 10, kind: input, shape index: {}]   ;;  %s4406_s11 = inlined_call_operand.hbm [shape: f32[2,10], index: 11, kind: output, shape index: {}]  }
   0x1   :  { %v2398_v0 = vld [vmem:[%s4396_s1 + $0x178] sm:$0xff]  ;;  %v2397_v2 = vld [vmem:[%s4396_s1 + $0x170] sm:$0xff]  ;;  %v2396_v4 = vld [vmem:[%s4396_s1 + $0x168] sm:$0xff]  ;;  %193 = vmatprep.mubr.f32.mxu0 %v4407_v50  ;;  %330 = vmatprep.mubr.f32.mxu1 %v4407_v50 }
   0x2   :  { %v70_v1 = vld [vmem:[%s4396_s1 + $0xb8] sm:$0xff]  ;;  %137 = vmatprep.subr.mxu0 %v2398_v0  ;;  %v69_v3 = vld [vmem:[%s4396_s1 + $0xb0] sm:$0xff]  ;;  %v68_v5 = vld [vmem:[%s4396_s1 + $0xa8] sm:$0xff] }
   0x3   :  { %274 = vmatprep.subr.mxu1 %v70_v1  ;;  %138 = vmatpush1.msra.mxu0 %v2397_v2  ;;  %v2395_v6 = vld [vmem:[%s4396_s1 + $0x160] sm:$0xff]  ;;  %v2394_v8 = vld [vmem:[%s4396_s1 + $0x158] sm:$0xff]  ;;  %v2393_v10 = vld [vmem:[%s4396_s1 + $0x150] sm:$0xff] }
   0x4   :  { %275 = vmatpush1.msra.mxu1 %v69_v3  ;;  %v67_v7 = vld [vmem:[%s4396_s1 + $0xa0] sm:$0xff]  ;;  %139 = vmatprep.subr.mxu0 %v2396_v4  ;;  %v66_v9 = vld [vmem:[%s4396_s1 + $0x98] sm:$0xff]  ;;  %v65_v11 = vld [vmem:[%s4396_s1 + $0x90] sm:$0xff] }
   0x5   :  { %276 = vmatprep.subr.mxu1 %v68_v5  ;;  %140 = vmatpush1.msra.mxu0 %v2395_v6  ;;  %v2392_v12 = vld [vmem:[%s4396_s1 + $0x148] sm:$0xff]  ;;  %v2391_v14 = vld [vmem:[%s4396_s1 + $0x140] sm:$0xff]  ;;  %v2390_v16 = vld [vmem:[%s4396_s1 + $0x138] sm:$0xff] }
   0x6   :  { %277 = vmatpush1.msra.mxu1 %v67_v7  ;;  %v64_v13 = vld [vmem:[%s4396_s1 + $0x88] sm:$0xff]  ;;  %141 = vmatprep.subr.mxu0 %v2394_v8  ;;  %v63_v15 = vld [vmem:[%s4396_s1 + $0x80] sm:$0xff]  ;;  %v62_v17 = vld [vmem:[%s4396_s1 + $0x78] sm:$0xff] }
   0x7   :  { %278 = vmatprep.subr.mxu1 %v66_v9  ;;  %142 = vmatpush1.msra.mxu0 %v2393_v10  ;;  %v2389_v18 = vld [vmem:[%s4396_s1 + $0x130] sm:$0xff]  ;;  %v2388_v20 = vld [vmem:[%s4396_s1 + $0x128] sm:$0xff]  ;;  %v2387_v22 = vld [vmem:[%s4396_s1 + $0x120] sm:$0xff] }
   0x8   :  { %279 = vmatpush1.msra.mxu1 %v65_v11  ;;  %143 = vmatprep.subr.mxu0 %v2392_v12  ;;  %v61_v19 = vld [vmem:[%s4396_s1 + $0x70] sm:$0xff]  ;;  %v60_v21 = vld [vmem:[%s4396_s1 + $0x68] sm:$0xff]  ;;  %v59_v23 = vld [vmem:[%s4396_s1 + $0x60] sm:$0xff] }
   0x9   :  { %280 = vmatprep.subr.mxu1 %v64_v13  ;;  %144 = vmatpush1.msra.mxu0 %v2391_v14  ;;  %v2386_v24 = vld [vmem:[%s4396_s1 + $0x118] sm:$0xff]  ;;  %v2385_v26 = vld [vmem:[%s4396_s1 + $0x110] sm:$0xff]  ;;  %v2384_v28 = vld [vmem:[%s4396_s1 + $0x108] sm:$0xff] }
   0xa   :  { %281 = vmatpush1.msra.mxu1 %v63_v15  ;;  %145 = vmatprep.subr.mxu0 %v2390_v16  ;;  %v58_v25 = vld [vmem:[%s4396_s1 + $0x58] sm:$0xff]  ;;  %v57_v27 = vld [vmem:[%s4396_s1 + $0x50] sm:$0xff]  ;;  %v56_v29 = vld [vmem:[%s4396_s1 + $0x48] sm:$0xff] }
   0xb   :  { %282 = vmatprep.subr.mxu1 %v62_v17  ;;  %146 = vmatpush1.msra.mxu0 %v2389_v18  ;;  %v2383_v30 = vld [vmem:[%s4396_s1 + $0x100] sm:$0xff]  ;;  %v2382_v32 = vld [vmem:[%s4396_s1 + $0xf8] sm:$0xff]  ;;  %v2381_v34 = vld [vmem:[%s4396_s1 + $0xf0] sm:$0xff] }
   0xc   :  { %283 = vmatpush1.msra.mxu1 %v61_v19  ;;  %147 = vmatprep.subr.mxu0 %v2388_v20  ;;  %v55_v31 = vld [vmem:[%s4396_s1 + $0x40] sm:$0xff]  ;;  %v54_v33 = vld [vmem:[%s4396_s1 + $0x38] sm:$0xff]  ;;  %v53_v35 = vld [vmem:[%s4396_s1 + $0x30] sm:$0xff] }
   0xd   :  { %284 = vmatprep.subr.mxu1 %v60_v21  ;;  %148 = vmatpush1.msra.mxu0 %v2387_v22  ;;  %v2380_v36 = vld [vmem:[%s4396_s1 + $0xe8] sm:$0xff]  ;;  %v2379_v38 = vld [vmem:[%s4396_s1 + $0xe0] sm:$0xff]  ;;  %v2378_v40 = vld [vmem:[%s4396_s1 + $0xd8] sm:$0xff] }
   0xe   :  { %285 = vmatpush1.msra.mxu1 %v59_v23  ;;  %149 = vmatprep.subr.mxu0 %v2386_v24  ;;  %v52_v37 = vld [vmem:[%s4396_s1 + $0x28] sm:$0xff]  ;;  %v51_v39 = vld [vmem:[%s4396_s1 + $0x20] sm:$0xff]  ;;  %v50_v41 = vld [vmem:[%s4396_s1 + $0x18] sm:$0xff] }
   0xf   :  { %286 = vmatprep.subr.mxu1 %v58_v25  ;;  %150 = vmatpush1.msra.mxu0 %v2385_v26  ;;  %v2377_v42 = vld [vmem:[%s4396_s1 + $0xd0] sm:$0xff]  ;;  %v2376_v44 = vld [vmem:[%s4396_s1 + $0xc8] sm:$0xff]  ;;  %v2375_v46 = vld [vmem:[%s4396_s1 + $0xc0] sm:$0xff] }
  0x10   :  { %287 = vmatpush1.msra.mxu1 %v57_v27  ;;  %151 = vmatprep.subr.mxu0 %v2384_v28  ;;  %v49_v43 = vld [vmem:[%s4396_s1 + $0x10] sm:$0xff]  ;;  %v48_v45 = vld [vmem:[%s4396_s1 + $0x8] sm:$0xff]  ;;  %v47_v47 = vld [vmem:[%s4396_s1] sm:$0xff] }
  0x11   :  { %288 = vmatprep.subr.mxu1 %v56_v29  ;;  %152 = vmatpush1.msra.mxu0 %v2383_v30  ;;  %v71_v48 = vld [vmem:[%s4395_s0 + $0x1] sm:$0xff]  ;;  %v2438_v51 = vld [vmem:[%s4396_s1 + $0x238] sm:$0xff]  ;;  %v2437_v52 = vld [vmem:[%s4396_s1 + $0x230] sm:$0xff] }
  0x12   :  { %289 = vmatpush1.msra.mxu1 %v55_v31  ;;  %153 = vmatprep.subr.mxu0 %v2382_v32  ;;  %v39_v49 = vld [vmem:[%s4395_s0] sm:$0xff]  ;;  %v2436_v53 = vld [vmem:[%s4396_s1 + $0x228] sm:$0xff]  ;;  %v2470_v54 = vld [vmem:[%s4396_s1 + $0x2f8] sm:$0xff] }
  0x13   :  { %290 = vmatprep.subr.mxu1 %v54_v33  ;;  %154 = vmatpush1.msra.mxu0 %v2381_v34  ;;  %v72_v55 = vld [vmem:[%s4395_s0 + $0x9] sm:$0xff]  ;;  %v2435_v57 = vld [vmem:[%s4396_s1 + $0x220] sm:$0xff]  ;;  %v2434_v58 = vld [vmem:[%s4396_s1 + $0x218] sm:$0xff] }
  0x14   :  { %291 = vmatpush1.msra.mxu1 %v53_v35  ;;  %155 = vmatprep.subr.mxu0 %v2380_v36  ;;  %v40_v56 = vld [vmem:[%s4395_s0 + $0x8] sm:$0xff]  ;;  %v2433_v59 = vld [vmem:[%s4396_s1 + $0x210] sm:$0xff]  ;;  %v2431_v0 = vld [vmem:[%s4396_s1 + $0x200] sm:$0xff] }
  0x15   :  { %292 = vmatprep.subr.mxu1 %v52_v37  ;;  %156 = vmatpush1.msra.mxu0 %v2379_v38  ;;  %v2469_v60 = vld [vmem:[%s4396_s1 + $0x2f0] sm:$0xff]  ;;  %v2432_v63 = vld [vmem:[%s4396_s1 + $0x208] sm:$0xff]  ;;  %v2430_v1 = vld [vmem:[%s4396_s1 + $0x1f8] sm:$0xff] }
  0x16   :  { %293 = vmatpush1.msra.mxu1 %v51_v39  ;;  %157 = vmatprep.subr.mxu0 %v2378_v40  ;;  %v73_v61 = vld [vmem:[%s4395_s0 + $0x11] sm:$0xff]  ;;  %v2468_v2 = vld [vmem:[%s4396_s1 + $0x2e8] sm:$0xff]  ;;  %v74_v3 = vld [vmem:[%s4395_s0 + $0x19] sm:$0xff] }
  0x17   :  { %294 = vmatprep.subr.mxu1 %v50_v41  ;;  %158 = vmatpush1.msra.mxu0 %v2377_v42  ;;  %v41_v62 = vld [vmem:[%s4395_s0 + $0x10] sm:$0xff]  ;;  %v42_v4 = vld [vmem:[%s4395_s0 + $0x18] sm:$0xff]  ;;  %v2467_v6 = vld [vmem:[%s4396_s1 + $0x2e0] sm:$0xff] }
  0x18   :  { %295 = vmatpush1.msra.mxu1 %v49_v43  ;;  %159 = vmatprep.subr.mxu0 %v2376_v44  ;;  %v2429_v5 = vld [vmem:[%s4396_s1 + $0x1f0] sm:$0xff]  ;;  %v2428_v7 = vld [vmem:[%s4396_s1 + $0x1e8] sm:$0xff]  ;;  %v2466_v8 = vld [vmem:[%s4396_s1 + $0x2d8] sm:$0xff] }
  0x19   :  { %296 = vmatprep.subr.mxu1 %v48_v45  ;;  %160 = vmatpush1.msra.mxu0 %v2375_v46  ;;  %v2427_v9 = vld [vmem:[%s4396_s1 + $0x1e0] sm:$0xff]  ;;  %v2465_v10 = vld [vmem:[%s4396_s1 + $0x2d0] sm:$0xff]  ;;  %v2426_v13 = vld [vmem:[%s4396_s1 + $0x1d8] sm:$0xff] }
  0x1a   :  { %297 = vmatpush1.msra.mxu1 %v47_v47  ;;  %2399 = vmatmul.mubr.msk.f32.vlgmr.msra.gmra.mxu0 %vm104_vm0, %v71_v48  ;;  %v75_v11 = vld [vmem:[%s4395_s0 + $0x21] sm:$0xff]  ;;  %v2425_v15 = vld [vmem:[%s4396_s1 + $0x1d0] sm:$0xff]  ;;  %v2462_v17 = vld [vmem:[%s4396_s1 + $0x2b8] sm:$0xff] }
  0x1b   :  { %2407 = vmatmul.mubr.msk.f32.vlgmr.msra.gmra.mxu1 %vm104_vm0, %v39_v49  ;;  %444 = vmatprep.subr.mxu0 %v2438_v51  ;;  %v43_v12 = vld [vmem:[%s4395_s0 + $0x20] sm:$0xff]  ;;  %v2464_v14 = vld [vmem:[%s4396_s1 + $0x2c8] sm:$0xff]  ;;  %v2461_v19 = vld [vmem:[%s4396_s1 + $0x2b0] sm:$0xff] }
  0x1c   :  { %199 = vmatprep.mubr.f32.mxu0 %v4407_v50  ;;  %445 = vmatpush1.msra.mxu0 %v2437_v52  ;;  %v2463_v16 = vld [vmem:[%s4396_s1 + $0x2c0] sm:$0xff]  ;;  %v2424_v18 = vld [vmem:[%s4396_s1 + $0x1c8] sm:$0xff]  ;;  %v2422_v24 = vld [vmem:[%s4396_s1 + $0x1b8] sm:$0xff] }
  0x1d   :  { %336 = vmatprep.mubr.f32.mxu1 %v4407_v50  ;;  %446 = vmatprep.subr.mxu0 %v2436_v53  ;;  %v76_v20 = vld [vmem:[%s4395_s0 + $0x29] sm:$0xff]  ;;  %v2423_v22 = vld [vmem:[%s4396_s1 + $0x1c0] sm:$0xff]  ;;  %v2458_v26 = vld [vmem:[%s4396_s1 + $0x298] sm:$0xff] }
  0x1e   :  { %630 = vmatprep.subr.mxu1 %v2470_v54  ;;  %2400 = vmatmul.mubr.msk.f32.gmra.mxu0 %vm104_vm0, %v72_v55  ;;  %v44_v21 = vld [vmem:[%s4395_s0 + $0x28] sm:$0xff]  ;;  %v2459_v25 = vld [vmem:[%s4396_s1 + $0x2a0] sm:$0xff]  ;;  %v2421_v27 = vld [vmem:[%s4396_s1 + $0x1b0] sm:$0xff] }
  0x1f   :  { %2408 = vmatmul.mubr.msk.f32.gmra.mxu1 %vm104_vm0, %v40_v56  ;;  %447 = vmatpush1.msra.mxu0 %v2435_v57  ;;  %v2460_v23 = vld [vmem:[%s4396_s1 + $0x2a8] sm:$0xff]  ;;  %v2457_v28 = vld [vmem:[%s4396_s1 + $0x290] sm:$0xff]  ;;  %v2419_v33 = vld [vmem:[%s4396_s1 + $0x1a0] sm:$0xff] }
  0x20   :  { %205 = vmatprep.mubr.f32.mxu0 %v4407_v50  ;;  %448 = vmatprep.subr.mxu0 %v2434_v58  ;;  %v77_v29 = vld [vmem:[%s4395_s0 + $0x31] sm:$0xff]  ;;  %v2420_v31 = vld [vmem:[%s4396_s1 + $0x1a8] sm:$0xff]  ;;  %v2455_v34 = vld [vmem:[%s4396_s1 + $0x280] sm:$0xff] }
  0x21   :  { %342 = vmatprep.mubr.f32.mxu1 %v4407_v50  ;;  %449 = vmatpush1.msra.mxu0 %v2433_v59  ;;  %v45_v30 = vld [vmem:[%s4395_s0 + $0x30] sm:$0xff]  ;;  %v2456_v32 = vld [vmem:[%s4396_s1 + $0x288] sm:$0xff] }
  0x22   :  { %631 = vmatpush1.msra.mxu1 %v2469_v60  ;;  %2401 = vmatmul.mubr.msk.f32.gmra.mxu0 %vm104_vm0, %v73_v61 }
  0x23   :  { %2409 = vmatmul.mubr.msk.f32.gmra.mxu1 %vm104_vm0, %v41_v62  ;;  %450 = vmatprep.subr.mxu0 %v2432_v63 }
  0x24   :  { %211 = vmatprep.mubr.f32.mxu0 %v4407_v50  ;;  %451 = vmatpush1.msra.mxu0 %v2431_v0 }
  0x25   :  { %348 = vmatprep.mubr.f32.mxu1 %v4407_v50  ;;  %452 = vmatprep.subr.mxu0 %v2430_v1 }
  0x26   :  { %632 = vmatprep.subr.mxu1 %v2468_v2  ;;  %2402 = vmatmul.mubr.msk.f32.gmra.mxu0 %vm104_vm0, %v74_v3 }
  0x27   :  { %2410 = vmatmul.mubr.msk.f32.gmra.mxu1 %vm104_vm0, %v42_v4  ;;  %453 = vmatpush1.msra.mxu0 %v2429_v5 }
  0x28   :  { %633 = vmatpush1.msra.mxu1 %v2467_v6  ;;  %454 = vmatprep.subr.mxu0 %v2428_v7 }
  0x29   :  { %634 = vmatprep.subr.mxu1 %v2466_v8  ;;  %217 = vmatprep.mubr.f32.mxu0 %v4407_v50 }
  0x2a   :  { %354 = vmatprep.mubr.f32.mxu1 %v4407_v50  ;;  %455 = vmatpush1.msra.mxu0 %v2427_v9 }
  0x2b   :  { %635 = vmatpush1.msra.mxu1 %v2465_v10  ;;  %2403 = vmatmul.mubr.msk.f32.gmra.mxu0 %vm104_vm0, %v75_v11 }
  0x2c   :  { %2411 = vmatmul.mubr.msk.f32.gmra.mxu1 %vm104_vm0, %v43_v12  ;;  %456 = vmatprep.subr.mxu0 %v2426_v13 }
  0x2d   :  { %636 = vmatprep.subr.mxu1 %v2464_v14  ;;  %457 = vmatpush1.msra.mxu0 %v2425_v15 }
  0x2e   :  { %637 = vmatpush1.msra.mxu1 %v2463_v16  ;;  %223 = vmatprep.mubr.f32.mxu0 %v4407_v50 }
  0x2f   :  { %638 = vmatprep.subr.mxu1 %v2462_v17  ;;  %360 = vmatprep.mubr.f32.mxu1 %v4407_v50 }
  0x30   :  { %458 = vmatprep.subr.mxu0 %v2424_v18  ;;  %639 = vmatpush1.msra.mxu1 %v2461_v19 }
  0x31   :  { %2404 = vmatmul.mubr.msk.f32.gmra.mxu0 %vm104_vm0, %v76_v20  ;;  %2412 = vmatmul.mubr.msk.f32.gmra.mxu1 %vm104_vm0, %v44_v21 }
  0x32   :  { %459 = vmatpush1.msra.mxu0 %v2423_v22  ;;  %640 = vmatprep.subr.mxu1 %v2460_v23 }
  0x33   :  { %460 = vmatprep.subr.mxu0 %v2422_v24  ;;  %641 = vmatpush1.msra.mxu1 %v2459_v25 }
  0x34   :  { %229 = vmatprep.mubr.f32.mxu0 %v4407_v50  ;;  %642 = vmatprep.subr.mxu1 %v2458_v26 }
  0x35   :  { %366 = vmatprep.mubr.f32.mxu1 %v4407_v50  ;;  %461 = vmatpush1.msra.mxu0 %v2421_v27 }
  0x36   :  { %643 = vmatpush1.msra.mxu1 %v2457_v28 }
  0x37   :  { %16 = vsyncpa [#allocation7], 0  ;;  %2405 = vmatmul.mubr.msk.f32.gmra.mxu0 %vm104_vm0, %v77_v29  ;;  %2413 = vmatmul.mubr.msk.f32.gmra.mxu1 %vm104_vm0, %v45_v30  ;;  %v2454_v35 = vld [vmem:[%s4396_s1 + $0x278] sm:$0xff]  ;;  %v2453_v37 = vld [vmem:[%s4396_s1 + $0x270] sm:$0xff]  ;;  %vm1054_vm1 = vcmask 687104   ;;  %vm1153_vm2 = vcmask 1043456  }
  0x38   :  { %462 = vmatprep.subr.mxu0 %v2420_v31  ;;  %644 = vmatprep.subr.mxu1 %v2456_v32  ;;  %v2418_v36 = vld [vmem:[%s4396_s1 + $0x198] sm:$0xff]  ;;  %v2417_v40 = vld [vmem:[%s4396_s1 + $0x190] sm:$0xff]  ;;  %v2452_v41 = vld [vmem:[%s4396_s1 + $0x268] sm:$0xff]  ;;  %vm1029_vm3 = vcmask 359424   ;;  %vm1073_vm4 = vcmask 685056   ;;  %vm1834_vm5 = vcmask 392192  }
  0x39   :  { %463 = vmatpush1.msra.mxu0 %v2419_v33  ;;  %645 = vmatpush1.msra.mxu1 %v2455_v34  ;;  %v78_v38 = vld [vmem:[%s4395_s0 + $0x39] sm:$0xff]  ;;  %v2416_v42 = vld [vmem:[%s4396_s1 + $0x188] sm:$0xff]  ;;  %v2449_v46 = vld [vmem:[%s4396_s1 + $0x250] sm:$0xff]  ;;  %vm1847_vm6 = vcmask 654336   ;;  %vm1857_vm7 = vcmask 648192   ;;  %s2794_s14 = smov 112  }
  0x3a   :  { %646 = vmatprep.subr.mxu1 %v2454_v35  ;;  %235 = vmatprep.mubr.f32.mxu0 %v4407_v50  ;;  %v46_v39 = vld [vmem:[%s4395_s0 + $0x38] sm:$0xff]  ;;  %v2451_v43 = vld [vmem:[%s4396_s1 + $0x260] sm:$0xff]  ;;  %v2448_v48 = vld [vmem:[%s4396_s1 + $0x248] sm:$0xff]  ;;  %s2795_s15 = smov 80   ;;  %s2796_s26 = smov 32   ;;  %vm1877_vm8 = vcmask 1042048  }
  0x3b   :  { %372 = vmatprep.mubr.f32.mxu1 %v4407_v50  ;;  %464 = vmatprep.subr.mxu0 %v2418_v36  ;;  %v2415_v44 = vld [vmem:[%s4396_s1 + $0x180] sm:$0xff]  ;;  %v2450_v45 = vld [vmem:[%s4396_s1 + $0x258] sm:$0xff]  ;;  %v2501_v52 = vld [vmem:[%s4396_s1 + $0x3b0] sm:$0xff]  ;;  %s2797_s12 = smov 64   ;;  %vm1878_vm9 = vcmask 257026   ;;  %vm1918_vm10 = vcmask 1042304  }
  0x3c   :  { %647 = vmatpush1.msra.mxu1 %v2453_v37  ;;  %2406 = vmatmul.mubr.msk.f32.gmra.mxu0 %vm104_vm0, %v78_v38  ;;  %v379_v47 = vld [vmem:[%s4395_s0 + $0x2] sm:$0xff]  ;;  %v2502_v49 = vld [vmem:[%s4396_s1 + $0x3b8] sm:$0xff]  ;;  %v380_v55 = vld [vmem:[%s4395_s0 + $0xa] sm:$0xff]  ;;  %vm1919_vm11 = vcmask 519170   ;;  %vm1915_vm13 = vcmask 916480   ;;  %vm1897_vm14 = vcmask 910592  }
  0x3d   :  { %2414 = vmatmul.mubr.msk.f32.gmra.mxu1 %vm104_vm0, %v46_v39  ;;  %465 = vmatpush1.msra.mxu0 %v2417_v40  ;;  %v2447_v51 = vld [vmem:[%s4396_s1 + $0x240] sm:$0xff]  ;;  %v2500_v54 = vld [vmem:[%s4396_s1 + $0x3a8] sm:$0xff]  ;;  %v2498_v58 = vld [vmem:[%s4396_s1 + $0x398] sm:$0xff]  ;;  %vm1941_vm15 = vcmask 1041920   ;;  %s2799_s13 = smov [#allocation6]  }
  0x3e   :  { %648 = vmatprep.subr.mxu1 %v2452_v41  ;;  %466 = vmatprep.subr.mxu0 %v2416_v42  ;;  %v565_v53 = vld [vmem:[%s4395_s0 + $0x3] sm:$0xff]  ;;  %v566_v57 = vld [vmem:[%s4395_s0 + $0xb] sm:$0xff]  ;;  %v567_v63 = vld [vmem:[%s4395_s0 + $0x13] sm:$0xff] }
  0x3f   :  { %649 = vmatpush1.msra.mxu1 %v2451_v43  ;;  %467 = vmatpush1.msra.mxu0 %v2415_v44  ;;  %v2499_v56 = vld [vmem:[%s4396_s1 + $0x3a0] sm:$0xff]  ;;  %v2497_v59 = vld [vmem:[%s4396_s1 + $0x390] sm:$0xff]  ;;  %v2496_v61 = vld [vmem:[%s4396_s1 + $0x388] sm:$0xff] }
  0x40   :  { %650 = vmatprep.subr.mxu1 %v2450_v45  ;;  %500 = vmatprep.mubr.f32.mxu0 %v4407_v50  ;;  %v381_v60 = vld [vmem:[%s4395_s0 + $0x12] sm:$0xff]  ;;  %v2495_v62 = vld [vmem:[%s4396_s1 + $0x380] sm:$0xff]  ;;  %v2492_v3 = vld [vmem:[%s4396_s1 + $0x368] sm:$0xff] }
  0x41   :  { %651 = vmatpush1.msra.mxu1 %v2449_v46  ;;  %2439 = vmatmul.mubr.msk.f32.vlgmr.msra.gmra.mxu0 %vm104_vm0, %v379_v47  ;;  %v2494_v0 = vld [vmem:[%s4396_s1 + $0x378] sm:$0xff]  ;;  %v2493_v1 = vld [vmem:[%s4396_s1 + $0x370] sm:$0xff]  ;;  %v2491_v4 = vld [vmem:[%s4396_s1 + $0x360] sm:$0xff] }
  0x42   :  { %652 = vmatprep.subr.mxu1 %v2448_v48  ;;  %816 = vmatprep.subr.mxu0 %v2502_v49  ;;  %v382_v2 = vld [vmem:[%s4395_s0 + $0x1a] sm:$0xff]  ;;  %v2489_v7 = vld [vmem:[%s4396_s1 + $0x350] sm:$0xff]  ;;  %v383_v8 = vld [vmem:[%s4395_s0 + $0x22] sm:$0xff] }
  0x43   :  { %653 = vmatpush1.msra.mxu1 %v2447_v51  ;;  %686 = vmatprep.mubr.f32.mxu1 %v4407_v50  ;;  %v568_v5 = vld [vmem:[%s4395_s0 + $0x1b] sm:$0xff]  ;;  %v2488_v9 = vld [vmem:[%s4396_s1 + $0x348] sm:$0xff]  ;;  %v2485_v13 = vld [vmem:[%s4396_s1 + $0x330] sm:$0xff] }
  0x44   :  { %817 = vmatpush1.msra.mxu0 %v2501_v52  ;;  %2471 = vmatmul.mubr.msk.f32.vlgmr.msra.gmra.mxu1 %vm104_vm0, %v565_v53  ;;  %v2490_v6 = vld [vmem:[%s4396_s1 + $0x358] sm:$0xff]  ;;  %v2487_v10 = vld [vmem:[%s4396_s1 + $0x340] sm:$0xff]  ;;  %v384_v14 = vld [vmem:[%s4395_s0 + $0x2a] sm:$0xff] }
  0x45   :  { %506 = vmatprep.mubr.f32.mxu0 %v4407_v50  ;;  %818 = vmatprep.subr.mxu0 %v2500_v54  ;;  %v569_v11 = vld [vmem:[%s4395_s0 + $0x23] sm:$0xff]  ;;  %v2486_v12 = vld [vmem:[%s4396_s1 + $0x338] sm:$0xff]  ;;  %v570_v17 = vld [vmem:[%s4395_s0 + $0x2b] sm:$0xff] }
  0x46   :  { %2440 = vmatmul.mubr.msk.f32.gmra.mxu0 %vm104_vm0, %v380_v55  ;;  %692 = vmatprep.mubr.f32.mxu1 %v4407_v50  ;;  %v2484_v15 = vld [vmem:[%s4396_s1 + $0x328] sm:$0xff]  ;;  %v2483_v16 = vld [vmem:[%s4396_s1 + $0x320] sm:$0xff]  ;;  %v2482_v18 = vld [vmem:[%s4396_s1 + $0x318] sm:$0xff] }
  0x47   :  { %819 = vmatpush1.msra.mxu0 %v2499_v56  ;;  %512 = vmatprep.mubr.f32.mxu0 %v4407_v50  ;;  %v2481_v19 = vld [vmem:[%s4396_s1 + $0x310] sm:$0xff]  ;;  %v2480_v21 = vld [vmem:[%s4396_s1 + $0x308] sm:$0xff]  ;;  %v2479_v22 = vld [vmem:[%s4396_s1 + $0x300] sm:$0xff]  ;;  %s2791_s1 = smov 44  }
  0x48   :  { %2472 = vmatmul.mubr.msk.f32.gmra.mxu1 %vm104_vm0, %v566_v57  ;;  %820 = vmatprep.subr.mxu0 %v2498_v58  ;;  %v385_v20 = vld [vmem:[%s4395_s0 + $0x32] sm:$0xff]  ;;  %v386_v24 = vld [vmem:[%s4395_s0 + $0x3a] sm:$0xff]  ;;  %v751_v26 = vld [vmem:[%s4395_s0 + $0x4] sm:$0xff] }
  0x49   :  { %821 = vmatpush1.msra.mxu0 %v2497_v59  ;;  %698 = vmatprep.mubr.f32.mxu1 %v4407_v50  ;;  %v571_v23 = vld [vmem:[%s4395_s0 + $0x33] sm:$0xff]  ;;  %v572_v25 = vld [vmem:[%s4395_s0 + $0x3b] sm:$0xff]  ;;  %v755_v30 = vld [vmem:[%s4395_s0 + $0x24] sm:$0xff] }
  0x4a   :  { %2441 = vmatmul.mubr.msk.f32.gmra.mxu0 %vm104_vm0, %v381_v60  ;;  %822 = vmatprep.subr.mxu0 %v2496_v61  ;;  %v752_v27 = vld [vmem:[%s4395_s0 + $0xc] sm:$0xff]  ;;  %v753_v28 = vld [vmem:[%s4395_s0 + $0x14] sm:$0xff]  ;;  %v754_v29 = vld [vmem:[%s4395_s0 + $0x1c] sm:$0xff] }
  0x4b   :  { %823 = vmatpush1.msra.mxu0 %v2495_v62  ;;  %518 = vmatprep.mubr.f32.mxu0 %v4407_v50  ;;  %v756_v31 = vld [vmem:[%s4395_s0 + $0x2c] sm:$0xff]  ;;  %v757_v32 = vld [vmem:[%s4395_s0 + $0x34] sm:$0xff]  ;;  %v758_v33 = vld [vmem:[%s4395_s0 + $0x3c] sm:$0xff] }
  0x4c   :  { %2473 = vmatmul.mubr.msk.f32.gmra.mxu1 %vm104_vm0, %v567_v63  ;;  %824 = vmatprep.subr.mxu0 %v2494_v0  ;;  %vm1879_vm12 = vmor %vm1878_vm9, %vm1877_vm8  ;;  %vm2359_vm8 = vcmask 74752  }
  0x4d   :  { %825 = vmatpush1.msra.mxu0 %v2493_v1  ;;  %704 = vmatprep.mubr.f32.mxu1 %v4407_v50 }
  0x4e   :  { %2442 = vmatmul.mubr.msk.f32.gmra.mxu0 %vm104_vm0, %v382_v2  ;;  %826 = vmatprep.subr.mxu0 %v2492_v3 }
  0x4f   :  { %524 = vmatprep.mubr.f32.mxu0 %v4407_v50  ;;  %827 = vmatpush1.msra.mxu0 %v2491_v4 }
  0x50   :  { %2474 = vmatmul.mubr.msk.f32.gmra.mxu1 %vm104_vm0, %v568_v5  ;;  %828 = vmatprep.subr.mxu0 %v2490_v6 }
  0x51   :  { %710 = vmatprep.mubr.f32.mxu1 %v4407_v50  ;;  %829 = vmatpush1.msra.mxu0 %v2489_v7 }
  0x52   :  { %2443 = vmatmul.mubr.msk.f32.gmra.mxu0 %vm104_vm0, %v383_v8  ;;  %830 = vmatprep.subr.mxu0 %v2488_v9 }
  0x53   :  { %530 = vmatprep.mubr.f32.mxu0 %v4407_v50  ;;  %831 = vmatpush1.msra.mxu0 %v2487_v10 }
  0x54   :  { %2475 = vmatmul.mubr.msk.f32.gmra.mxu1 %vm104_vm0, %v569_v11  ;;  %832 = vmatprep.subr.mxu0 %v2486_v12 }
  0x55   :  { %716 = vmatprep.mubr.f32.mxu1 %v4407_v50  ;;  %833 = vmatpush1.msra.mxu0 %v2485_v13 }
  0x56   :  { %2444 = vmatmul.mubr.msk.f32.gmra.mxu0 %vm104_vm0, %v384_v14  ;;  %834 = vmatprep.subr.mxu0 %v2484_v15 }
  0x57   :  { %536 = vmatprep.mubr.f32.mxu0 %v4407_v50  ;;  %835 = vmatpush1.msra.mxu0 %v2483_v16 }
  0x58   :  { %2476 = vmatmul.mubr.msk.f32.gmra.mxu1 %vm104_vm0, %v570_v17  ;;  %836 = vmatprep.subr.mxu0 %v2482_v18 }
  0x59   :  { %722 = vmatprep.mubr.f32.mxu1 %v4407_v50  ;;  %837 = vmatpush1.msra.mxu0 %v2481_v19  ;;  %v939_v19 = vlaneseq }
  0x5a   :  { %2445 = vmatmul.mubr.msk.f32.gmra.mxu0 %vm104_vm0, %v385_v20  ;;  %838 = vmatprep.subr.mxu0 %v2480_v21 }
  0x5b   :  { %542 = vmatprep.mubr.f32.mxu0 %v4407_v50  ;;  %839 = vmatpush1.msra.mxu0 %v2479_v22 }
  0x5c   :  { %2477 = vmatmul.mubr.msk.f32.gmra.mxu1 %vm104_vm0, %v571_v23  ;;  %v3484_v23 = vshrl.u32 %v939_v19, 7 }
  0x5d   :  { %728 = vmatprep.mubr.f32.mxu1 %v4407_v50 }
  0x5e   :  { %2446 = vmatmul.mubr.msk.f32.gmra.mxu0 %vm104_vm0, %v386_v24 }
  0x5f   :  { %872 = vmatprep.mubr.f32.mxu0 %v4407_v50 }
  0x60   :  { %2478 = vmatmul.mubr.msk.f32.gmra.mxu1 %vm104_vm0, %v572_v25 }
  0x61   :  { %1224 = vmatprep.mubr.f32.mxu1 %v4407_v50 }
  0x62   :  { %2503 = vmatmul.mubr.msk.f32.vlgmr.msra.gmra.mxu0 %vm104_vm0, %v751_v26 }
  0x63   :  { %878 = vmatprep.mubr.f32.mxu0 %v4407_v50 }
  0x66   :  { %2504 = vmatmul.mubr.msk.f32.gmra.mxu0 %vm104_vm0, %v752_v27 }
  0x67   :  { %884 = vmatprep.mubr.f32.mxu0 %v4407_v50 }
  0x6a   :  { %2505 = vmatmul.mubr.msk.f32.gmra.mxu0 %vm104_vm0, %v753_v28 }
  0x6b   :  { %890 = vmatprep.mubr.f32.mxu0 %v4407_v50 }
  0x6e   :  { %2506 = vmatmul.mubr.msk.f32.gmra.mxu0 %vm104_vm0, %v754_v29 }
  0x6f   :  { %896 = vmatprep.mubr.f32.mxu0 %v4407_v50 }
  0x72   :  { %2507 = vmatmul.mubr.msk.f32.gmra.mxu0 %vm104_vm0, %v755_v30  ;;  %v941_v30 = vsub.s32 0, %v3484_v23 }
  0x73   :  { %902 = vmatprep.mubr.f32.mxu0 %v4407_v50 }
  0x76   :  { %2508 = vmatmul.mubr.msk.f32.gmra.mxu0 %vm104_vm0, %v756_v31 }
  0x77   :  { %908 = vmatprep.mubr.f32.mxu0 %v4407_v50 }
  0x7a   :  { %2509 = vmatmul.mubr.msk.f32.gmra.mxu0 %vm104_vm0, %v757_v32  ;;  %v937_v32 = vld [vmem:[%s4397_s2] sm:$0x3]  ;;  %s2367_s2 = sshll.u32 %s2799_s13, 4  ;;  %s2368_s2 = int_to_ptr.vmem [resolvable:$true] %s2367_s2 }
  0x7b   :  { %914 = vmatprep.mubr.f32.mxu0 %v4407_v50  ;;  %p2773_p1 = scmp.lt.s32.totalorder %s2368_s2, %s2368_s2 }
  0x7e   :  { %2510 = vmatmul.mubr.msk.f32.gmra.mxu0 %vm104_vm0, %v758_v33  ;;  %v945_v33 = vsub.s32 1, %v3484_v23  ;;  %vm1942_vm0 = vcmask 125954  }
  0x7f   :  { %1465 = vmatprep.mubr.f32.mxu0 %v4407_v50 }
  0xda   :  { %v195_v34 = vpop.f32.mrf.mxu0 }
  0xdb   :  { %v332_v35 = vpop.f32.mrf.mxu1 }
  0xdc   :  { %v197_v36 = vpop.f32.mrf.mxu0  ;;  %v333_v25 = vadd.f32 %v332_v35, %v195_v34  ;;  %v4412_v35 = vmov 0.0  }
  0xdd   :  { %v334_v37 = vpop.f32.mrf.mxu1  ;;  %1087 = vst.msk [vmem:[#allocation3 + $0x1c] sm:$0xff] %vm1054_vm1, %v4412_v35 }
  0xde   :  { %v201_v38 = vpop.f32.mrf.mxu0  ;;  %v335_v28 = vadd.f32 %v334_v37, %v197_v36 }
  0xdf   :  { %v338_v39 = vpop.f32.mrf.mxu1 }
  0xe0   :  { %v3422_v40 = vpop.f32.mrf.mxu0  ;;  %v339_v19 = vadd.f32 %v338_v39, %v201_v38 }
  0xe1   :  { %v340_v41 = vpop.f32.mrf.mxu1 }
  0xe2   :  { %v3424_v42 = vpop.f32.mrf.mxu0  ;;  %v341_v36 = vadd.f32 %v340_v41, %v3422_v40  ;;  %v2532_v40 = vld [vmem:[%s4398_s3 + $0x158] sm:$0xf] }
  0xe3   :  { %v3426_v43 = vpop.f32.mrf.mxu1  ;;  %2533 = vmatprep.subr.msk.mxu1 %vm1153_vm2, %v2532_v40  ;;  %v2530_v40 = vld [vmem:[%s4398_s3 + $0x148] sm:$0xff] }
  0xe4   :  { %v3428_v44 = vpop.f32.mrf.mxu0  ;;  %v345_v38 = vadd.f32 %v3426_v43, %v3424_v42 }
  0xe5   :  { %v3430_v45 = vpop.f32.mrf.mxu1 }
  0xe6   :  { %v3432_v46 = vpop.f32.mrf.mxu0  ;;  %v347_v41 = vadd.f32 %v3430_v45, %v3428_v44 }
  0xe7   :  { %v3434_v47 = vpop.f32.mrf.mxu1 }
  0xe8   :  { %v3436_v48 = vpop.f32.mrf.mxu0 }
  0xe9   :  { %v3438_v49 = vpop.f32.mrf.mxu1 }
  0xeb   :  { %v3440_v51 = vpop.f32.mrf.mxu0 }
  0xec   :  { %v3442_v52 = vpop.f32.mrf.mxu1 }
  0xed   :  { %v3444_v53 = vpop.f32.mrf.mxu0 }
  0xee   :  { %v3446_v54 = vpop.f32.mrf.mxu1 }
  0xf1   :  { %v3448_v55 = vpop.f32.mrf.mxu0  ;;  %v3450_v56 = vpop.f32.mrf.mxu1 }
  0xf3   :  { %v3452_v57 = vpop.f32.mrf.mxu0  ;;  %v3454_v58 = vpop.f32.mrf.mxu1 }
  0xf7   :  { %v3456_v59 = vpop.f32.mrf.mxu0  ;;  %v3458_v60 = vpop.f32.mrf.mxu1 }
  0xf9   :  { %v3460_v61 = vpop.f32.mrf.mxu0  ;;  %v3462_v62 = vpop.f32.mrf.mxu1 }
  0xfc   :  { %v3464_v63 = vpop.f32.mrf.mxu0 }
  0xfd   :  { %v3466_v0 = vpop.f32.mrf.mxu1 }
  0xfe   :  { %v3468_v1 = vpop.f32.mrf.mxu0 }
  0xff   :  { %v3470_v3 = vpop.f32.mrf.mxu1 }
 0x100   :  { %4409 = vst [vmem:[#allocation9_spill] sm:$0xff] %v3470_v3 }
 0x101   :  { %v502_v2 = vpop.f32.mrf.mxu0 }
 0x102   :  { %v549_v29 = vadd.f32 %v502_v2, %v333_v25  ;;  %v3508_v25 = vrot.slane %v937_v32, %v941_v30 }
 0x103   :  { %v504_v4 = vpop.f32.mrf.mxu0 }
 0x104   :  { %v688_v5 = vpop.f32.mrf.mxu1  ;;  %v550_v50 = vadd.f32 %v504_v4, %v335_v28  ;;  %v3514_v4 = vrot.slane %v937_v32, %v945_v33 }
 0x105   :  { %v735_v37 = vadd.f32 %v688_v5, %v549_v29 }
 0x106   :  { %v508_v6 = vpop.f32.mrf.mxu0  ;;  %v690_v7 = vpop.f32.mrf.mxu1 }
 0x107   :  { %v551_v2 = vadd.f32 %v508_v6, %v339_v19  ;;  %v736_v28 = vadd.f32 %v690_v7, %v550_v50  ;;  %v351_v7 = vadd.f32 %v3434_v47, %v3432_v46  ;;  %v357_v47 = vadd.f32 %v3442_v52, %v3440_v51  ;;  %v2531_v51 = vld [vmem:[%s4398_s3 + $0x150] sm:$0xf]  ;;  %v2565_v52 = vld [vmem:[%s4398_s3 + $0x200] sm:$0xf] }
 0x108   :  { %v510_v8 = vpop.f32.mrf.mxu0  ;;  %v694_v9 = vpop.f32.mrf.mxu1  ;;  %2534 = vmatpush1.msk.msra.mxu1 %vm1153_vm2, %v2531_v51 }
 0x109   :  { %v737_v42 = vadd.f32 %v694_v9, %v551_v2  ;;  %v353_v9 = vadd.f32 %v3438_v49, %v3436_v48  ;;  %v2566_v48 = vld [vmem:[%s4398_s3 + $0x208] sm:$0xf]  ;;  %1172 = vmatprep.subr.mxu1 %v2530_v40 }
 0x10a   :  { %v514_v10 = vpop.f32.mrf.mxu0  ;;  %v696_v11 = vpop.f32.mrf.mxu1  ;;  %2567 = vmatprep.subr.msk.mxu0 %vm1153_vm2, %v2566_v48 }
 0x10b   :  { %v553_v43 = vadd.f32 %v514_v10, %v345_v38  ;;  %2568 = vmatpush1.msk.msra.mxu0 %vm1153_vm2, %v2565_v52 }
 0x10c   :  { %v516_v12 = vpop.f32.mrf.mxu0  ;;  %v700_v14 = vpop.f32.mrf.mxu1 }
 0x10e   :  { %v520_v13 = vpop.f32.mrf.mxu0  ;;  %v702_v17 = vpop.f32.mrf.mxu1 }
 0x110   :  { %v3472_v15 = vpop.f32.mrf.mxu0  ;;  %v3480_v21 = vpop.f32.mrf.mxu1 }
 0x112   :  { %v3474_v16 = vpop.f32.mrf.mxu0  ;;  %v3488_v26 = vpop.f32.mrf.mxu1 }
 0x114   :  { %v3476_v18 = vpop.f32.mrf.mxu0  ;;  %v3499_v3 = vpop.f32.mrf.mxu1 }
 0x116   :  { %v3478_v20 = vpop.f32.mrf.mxu0 }
 0x118   :  { %v3482_v22 = vpop.f32.mrf.mxu0 }
 0x11a   :  { %v3486_v24 = vpop.f32.mrf.mxu0 }
 0x11c   :  { %v3490_v27 = vpop.f32.mrf.mxu0 }
 0x11e   :  { %v3493_v31 = vpop.f32.mrf.mxu0 }
 0x11f   :  { %4410 = vst [vmem:[#allocation10_spill] sm:$0xff] %v3493_v31  ;;  %v3516_v31 = vpop.f32.mrf.mxu1 }
 0x120   :  { %v3501_v34 = vpop.f32.mrf.mxu0 }
 0x121   :  { %4411 = vst [vmem:[#allocation11_spill] sm:$0xff] %v3501_v34  ;;  %v552_v34 = vadd.f32 %v510_v8, %v341_v36  ;;  %v554_v8 = vadd.f32 %v516_v12, %v347_v41  ;;  %v3529_v19 = vpop.f32.mrf.mxu1  ;;  %v556_v12 = vadd.f32 %v3472_v15, %v353_v9  ;;  %v359_v15 = vadd.f32 %v3446_v54, %v3444_v53  ;;  %v2564_v41 = vld [vmem:[%s4398_s3 + $0x1f8] sm:$0xff]  ;;  %v2529_v54 = vld [vmem:[%s4398_s3 + $0x140] sm:$0xff] }
 0x122   :  { %v874_v39 = vpop.f32.mrf.mxu0  ;;  %1413 = vmatprep.subr.mxu0 %v2564_v41  ;;  %1173 = vmatpush1.msra.mxu1 %v2529_v54  ;;  %v365_v9 = vadd.f32 %v3454_v58, %v3452_v57  ;;  %v2525_v57 = vld [vmem:[%s4398_s3 + $0x120] sm:$0xff]  ;;  %v2559_v58 = vld [vmem:[%s4398_s3 + $0x1d0] sm:$0xff] }
 0x123   :  { %v921_v35 = vadd.f32 %v874_v39, %v735_v37  ;;  %v738_v32 = vadd.f32 %v696_v11, %v552_v34  ;;  %v739_v37 = vadd.f32 %v700_v14, %v553_v43  ;;  %v740_v11 = vadd.f32 %v702_v17, %v554_v8  ;;  %v3547_v49 = vpop.f32.mrf.mxu1  ;;  %v2528_v8 = vld [vmem:[%s4398_s3 + $0x138] sm:$0xff] }
 0x124   :  { %v876_v5 = vpop.f32.mrf.mxu0  ;;  %v557_v17 = vadd.f32 %v3474_v16, %v357_v47  ;;  %v2563_v16 = vld [vmem:[%s4398_s3 + $0x1f0] sm:$0xff]  ;;  %v742_v43 = vadd.f32 %v3488_v26, %v556_v12  ;;  %1174 = vmatprep.subr.mxu1 %v2528_v8  ;;  %v2521_v8 = vld [vmem:[%s4398_s3 + $0x100] sm:$0xff] }
 0x125   :  { %v922_v6 = vadd.f32 %v876_v5, %v736_v28  ;;  %v3525_v50 = vadd.f32 %v3508_v25, %v921_v35  ;;  %v555_v35 = vadd.f32 %v520_v13, %v351_v7  ;;  %1414 = vmatpush1.msra.mxu0 %v2563_v16 }
 0x126   :  { %v880_v29 = vpop.f32.mrf.mxu0 }
 0x127   :  { %v950_v36 = vadd.f32 %v3514_v4, %v922_v6  ;;  %v923_v44 = vadd.f32 %v880_v29, %v737_v42  ;;  %v965_v45 = vmax.f32 %v3525_v50, 0.0  ;;  %v741_v5 = vadd.f32 %v3480_v21, %v555_v35  ;;  %v2562_v29 = vld [vmem:[%s4398_s3 + $0x1e8] sm:$0xff] }
 0x128   :  { %v882_v10 = vpop.f32.mrf.mxu0  ;;  %v363_v21 = vadd.f32 %v3450_v56, %v3448_v55  ;;  %v558_v6 = vadd.f32 %v3476_v18, %v359_v15  ;;  %v2527_v18 = vld [vmem:[%s4398_s3 + $0x130] sm:$0xff]  ;;  %v2526_v35 = vld [vmem:[%s4398_s3 + $0x128] sm:$0xff]  ;;  %1415 = vmatprep.subr.mxu0 %v2562_v29  ;;  %v2524_v15 = vld [vmem:[%s4398_s3 + $0x118] sm:$0xff] }
 0x129   :  { %v924_v2 = vadd.f32 %v882_v10, %v738_v32  ;;  %997 = vrot.lane.b32.xlu0 %v965_v45, %s2791_s1  ;;  %v3539_v46 = vadd.f32 %v3508_v25, %v923_v44  ;;  %v966_v13 = vmax.f32 %v950_v36, 0.0  ;;  %v3593_v32 = vpop.f32.mrf.mxu1  ;;  %v2561_v44 = vld [vmem:[%s4398_s3 + $0x1e0] sm:$0xff]  ;;  %v743_v10 = vadd.f32 %v3499_v3, %v557_v17  ;;  %1175 = vmatpush1.msra.mxu1 %v2527_v18  ;;  %v2523_v17 = vld [vmem:[%s4398_s3 + $0x110] sm:$0xff] }
 0x12a   :  { %v886_v34 = vpop.f32.mrf.mxu0  ;;  %v559_v47 = vadd.f32 %v3478_v20, %v363_v21  ;;  %v369_v3 = vadd.f32 %v3458_v60, %v3456_v59  ;;  %v744_v20 = vadd.f32 %v3516_v31, %v558_v6  ;;  %1416 = vmatpush1.msra.mxu0 %v2561_v44  ;;  %1176 = vmatprep.subr.mxu1 %v2526_v35  ;;  %v2558_v59 = vld [vmem:[%s4398_s3 + $0x1c8] sm:$0xff] }
 0x12b   :  { %v952_v14 = vadd.f32 %v3514_v4, %v924_v2  ;;  %v925_v38 = vadd.f32 %v886_v34, %v739_v37  ;;  %v967_v39 = vmax.f32 %v3539_v46, 0.0  ;;  %v2560_v2 = vld [vmem:[%s4398_s3 + $0x1d8] sm:$0xff]  ;;  %v560_v34 = vadd.f32 %v3482_v22, %v365_v9  ;;  %1177 = vmatpush1.msra.mxu1 %v2525_v57 }
 0x12c   :  { %v888_v28 = vpop.f32.mrf.mxu0  ;;  %1417 = vmatprep.subr.mxu0 %v2560_v2  ;;  %v371_v60 = vadd.f32 %v3462_v62, %v3460_v61  ;;  %v561_v22 = vadd.f32 %v3486_v24, %v369_v3  ;;  %v745_v40 = vadd.f32 %v3529_v19, %v559_v47  ;;  %v2522_v61 = vld [vmem:[%s4398_s3 + $0x108] sm:$0xff]  ;;  %v2556_v62 = vld [vmem:[%s4398_s3 + $0x1b8] sm:$0xff]  ;;  %v375_v24 = vadd.f32 %v3466_v0, %v3464_v63  ;;  %v2555_v63 = vld [vmem:[%s4398_s3 + $0x1b0] sm:$0xff] }
 0x12d   :  { %v3571_v42 = vadd.f32 %v3508_v25, %v925_v38  ;;  %v926_v53 = vadd.f32 %v888_v28, %v740_v11  ;;  %1001 = vrot.lane.b32.xlu1 %v967_v39, %s2791_s1  ;;  %999 = vrot.lane.b32.xlu0 %v966_v13, %s2791_s1  ;;  %v968_v36 = vmax.f32 %v952_v14, 0.0  ;;  %v726_v13 = vpop.f32.mrf.mxu1  ;;  %v2557_v28 = vld [vmem:[%s4398_s3 + $0x1c0] sm:$0xff]  ;;  %v746_v19 = vadd.f32 %v3547_v49, %v560_v34  ;;  %v4413_v0 = vld [vmem:[#allocation9_spill] sm:$0xff] }
 0x12e   :  { %v892_v7 = vpop.f32.mrf.mxu0  ;;  %1418 = vmatpush1.msra.mxu0 %v2559_v58  ;;  %1178 = vmatprep.subr.mxu1 %v2524_v15  ;;  %v747_v49 = vadd.f32 %v3593_v32, %v561_v22  ;;  %v2553_v32 = vld [vmem:[%s4398_s3 + $0x1a0] sm:$0xff]  ;;  %v2552_v34 = vld [vmem:[%s4398_s3 + $0x198] sm:$0xff] }
 0x12f   :  { %v969_v55 = vmax.f32 %v3571_v42, 0.0  ;;  %v954_v56 = vadd.f32 %v3514_v4, %v926_v53  ;;  %v927_v26 = vadd.f32 %v892_v7, %v741_v5  ;;  %v562_v53 = vadd.f32 %v3490_v27, %v371_v60  ;;  %1419 = vmatprep.subr.mxu0 %v2558_v59  ;;  %v730_v16 = vpop.f32.mrf.mxu1  ;;  %1179 = vmatpush1.msra.mxu1 %v2523_v17  ;;  %v2516_v59 = vld [vmem:[%s4398_s3 + $0xd8] sm:$0xff]  ;;  %v2550_v60 = vld [vmem:[%s4398_s3 + $0x188] sm:$0xff] }
 0x130   :  { %v894_v37 = vpop.f32.mrf.mxu0  ;;  %1420 = vmatpush1.msra.mxu0 %v2557_v28  ;;  %v377_v27 = vadd.f32 %v4413_v0, %v3468_v1  ;;  %1180 = vmatprep.subr.mxu1 %v2522_v61  ;;  %v2519_v1 = vld [vmem:[%s4398_s3 + $0xf0] sm:$0xff]  ;;  %v2546_v0 = vld [vmem:[%s4398_s3 + $0x168] sm:$0xff] }
 0x131   :  { %v3614_v11 = vadd.f32 %v3508_v25, %v927_v26  ;;  %v928_v12 = vadd.f32 %v894_v37, %v742_v43  ;;  %1003 = vrot.lane.b32.xlu1 %v968_v36, %s2791_s1  ;;  %1005 = vrot.lane.b32.xlu0 %v969_v55, %s2791_s1  ;;  %v970_v14 = vmax.f32 %v954_v56, 0.0  ;;  %v2520_v36 = vld [vmem:[%s4398_s3 + $0xf8] sm:$0xff]  ;;  %v2554_v56 = vld [vmem:[%s4398_s3 + $0x1a8] sm:$0xff]  ;;  %v732_v47 = vpop.f32.mrf.mxu1 }
 0x132   :  { %v898_v48 = vpop.f32.mrf.mxu0  ;;  %1421 = vmatprep.subr.mxu0 %v2556_v62  ;;  %v4414_v26 = vld [vmem:[#allocation10_spill] sm:$0xff]  ;;  %v4415_v37 = vld [vmem:[#allocation11_spill] sm:$0xff]  ;;  %1181 = vmatpush1.msra.mxu1 %v2521_v8  ;;  %v2515_v61 = vld [vmem:[%s4398_s3 + $0xd0] sm:$0xff] }
 0x133   :  { %v971_v38 = vmax.f32 %v3614_v11, 0.0  ;;  %v956_v51 = vadd.f32 %v3514_v4, %v928_v12  ;;  %v929_v52 = vadd.f32 %v898_v48, %v743_v10  ;;  %v563_v18 = vadd.f32 %v4414_v26, %v375_v24  ;;  %1422 = vmatpush1.msra.mxu0 %v2555_v63  ;;  %1182 = vmatprep.subr.mxu1 %v2520_v36  ;;  %v2549_v62 = vld [vmem:[%s4398_s3 + $0x180] sm:$0xff]  ;;  %v2512_v63 = vld [vmem:[%s4398_s3 + $0xb8] sm:$0xff] }
 0x134   :  { %v900_v31 = vpop.f32.mrf.mxu0  ;;  %v748_v10 = vadd.f32 %v726_v13, %v562_v53  ;;  %v564_v35 = vadd.f32 %v4415_v37, %v377_v27  ;;  %1423 = vmatprep.subr.mxu0 %v2554_v56  ;;  %1183 = vmatpush1.msra.mxu1 %v2519_v1  ;;  %v2517_v13 = vld [vmem:[%s4398_s3 + $0xe0] sm:$0xff]  ;;  %v2548_v53 = vld [vmem:[%s4398_s3 + $0x178] sm:$0xff]  ;;  %v2511_v27 = vld [vmem:[%s4398_s3 + $0xb0] sm:$0xff] }
 0x135   :  { %v3649_v41 = vadd.f32 %v3508_v25, %v929_v52  ;;  %v930_v5 = vadd.f32 %v900_v31, %v744_v20  ;;  %1007 = vrot.lane.b32.xlu1 %v970_v14, %s2791_s1  ;;  %1009 = vrot.lane.b32.xlu0 %v971_v38, %s2791_s1  ;;  %v972_v21 = vmax.f32 %v956_v51, 0.0  ;;  %v2518_v20 = vld [vmem:[%s4398_s3 + $0xe8] sm:$0xff]  ;;  %v2551_v14 = vld [vmem:[%s4398_s3 + $0x190] sm:$0xff]  ;;  %v749_v51 = vadd.f32 %v730_v16, %v563_v18 }
 0x136   :  { %v904_v54 = vpop.f32.mrf.mxu0  ;;  %1424 = vmatpush1.msra.mxu0 %v2553_v32  ;;  %v750_v22 = vadd.f32 %v732_v47, %v564_v35  ;;  %1184 = vmatprep.subr.mxu1 %v2518_v20 }
 0x137   :  { %v973_v43 = vmax.f32 %v3649_v41, 0.0  ;;  %v958_v6 = vadd.f32 %v3514_v4, %v930_v5  ;;  %v931_v7 = vadd.f32 %v904_v54, %v745_v40  ;;  %1425 = vmatprep.subr.mxu0 %v2552_v34  ;;  %1185 = vmatpush1.msra.mxu1 %v2517_v13 }
 0x138   :  { %v906_v29 = vpop.f32.mrf.mxu0  ;;  %1426 = vmatpush1.msra.mxu0 %v2551_v14  ;;  %1186 = vmatprep.subr.mxu1 %v2516_v59 }
 0x139   :  { %v3684_v44 = vadd.f32 %v3508_v25, %v931_v7  ;;  %v932_v9 = vadd.f32 %v906_v29, %v746_v19  ;;  %1011 = vrot.lane.b32.xlu1 %v972_v21, %s2791_s1  ;;  %1013 = vrot.lane.b32.xlu0 %v973_v43, %s2791_s1  ;;  %v974_v12 = vmax.f32 %v958_v6, 0.0  ;;  %v2514_v19 = vld [vmem:[%s4398_s3 + $0xc8] sm:$0xff]  ;;  %v2513_v21 = vld [vmem:[%s4398_s3 + $0xc0] sm:$0xff] }
 0x13a   :  { %v910_v2 = vpop.f32.mrf.mxu0  ;;  %1427 = vmatprep.subr.mxu0 %v2550_v60  ;;  %v2547_v6 = vld [vmem:[%s4398_s3 + $0x170] sm:$0xff]  ;;  %1187 = vmatpush1.msra.mxu1 %v2515_v61  ;;  %v2622_v29 = vld [vmem:[%s4398_s3 + $0x368] sm:$0xf]  ;;  %v1112_v61 = vld [vmem:[%s4398_s3 + $0xa0] sm:$0xf] }
 0x13b   :  { %v975_v57 = vmax.f32 %v3684_v44, 0.0  ;;  %v960_v58 = vadd.f32 %v3514_v4, %v932_v9  ;;  %v933_v3 = vadd.f32 %v910_v2, %v747_v49  ;;  %1428 = vmatpush1.msra.mxu0 %v2549_v62  ;;  %1188 = vmatprep.subr.mxu1 %v2514_v19  ;;  %v1113_v49 = vld [vmem:[%s4398_s3 + $0xa8] sm:$0xf] }
 0x13c   :  { %v912_v48 = vpop.f32.mrf.mxu0  ;;  %1429 = vmatprep.subr.mxu0 %v2548_v53  ;;  %1189 = vmatpush1.msra.mxu1 %v2513_v21  ;;  %v2620_v53 = vld [vmem:[%s4398_s3 + $0x358] sm:$0xff]  ;;  %v1109_v21 = vld [vmem:[%s4398_s3 + $0x88] sm:$0xff] }
 0x13d   :  { %v3712_v52 = vadd.f32 %v3508_v25, %v933_v3  ;;  %v934_v15 = vadd.f32 %v912_v48, %v748_v10  ;;  %1015 = vrot.lane.b32.xlu1 %v974_v12, %s2791_s1  ;;  %1017 = vrot.lane.b32.xlu0 %v975_v57, %s2791_s1  ;;  %v976_v17 = vmax.f32 %v960_v58, 0.0 }
 0x13e   :  { %v916_v31 = vpop.f32.mrf.mxu0  ;;  %1430 = vmatpush1.msra.mxu0 %v2547_v6  ;;  %1190 = vmatprep.subr.mxu1 %v2512_v63  ;;  %v2618_v6 = vld [vmem:[%s4398_s3 + $0x348] sm:$0xff]  ;;  %v1106_v63 = vld [vmem:[%s4398_s3 + $0x70] sm:$0xff] }
 0x13f   :  { %v977_v28 = vmax.f32 %v3712_v52, 0.0  ;;  %v962_v40 = vadd.f32 %v3514_v4, %v934_v15  ;;  %v935_v5 = vadd.f32 %v916_v31, %v749_v51  ;;  %1431 = vmatprep.subr.mxu0 %v2546_v0  ;;  %1191 = vmatpush1.msra.mxu1 %v2511_v27  ;;  %v1111_v52 = vld [vmem:[%s4398_s3 + $0x98] sm:$0xff] }
 0x140   :  { %v918_v24 = vpop.f32.mrf.mxu0  ;;  %2539 = vmatprep.subr.msk.mxu1 %vm1153_vm2, %v1113_v49  ;;  %v2616_v49 = vld [vmem:[%s4398_s3 + $0x338] sm:$0xff] }
 0x141   :  { %v3739_v54 = vadd.f32 %v3508_v25, %v935_v5  ;;  %v936_v16 = vadd.f32 %v918_v24, %v750_v22  ;;  %1019 = vrot.lane.b32.xlu1 %v976_v17, %s2791_s1  ;;  %1021 = vrot.lane.b32.xlu0 %v977_v28, %s2791_s1  ;;  %v978_v7 = vmax.f32 %v962_v40, 0.0 }
 0x143   :  { %v979_v25 = vmax.f32 %v3739_v54, 0.0  ;;  %v964_v8 = vadd.f32 %v3514_v4, %v936_v16  ;;  %v2545_v4 = vld [vmem:[%s4398_s3 + $0x160] sm:$0xff]  ;;  %v1110_v54 = vld [vmem:[%s4398_s3 + $0x90] sm:$0xff] }
 0x144   :  { %1432 = vmatpush1.msra.mxu0 %v2545_v4  ;;  %v2619_v16 = vld [vmem:[%s4398_s3 + $0x350] sm:$0xff]  ;;  %v4416_v4 = vmov 0.0  }
 0x145   :  { %1023 = vrot.lane.b32.xlu1 %v978_v7, %s2791_s1  ;;  %1025 = vrot.lane.b32.xlu0 %v979_v25, %s2791_s1  ;;  %v980_v36 = vmax.f32 %v964_v8, 0.0  ;;  %v1108_v7 = vld [vmem:[%s4398_s3 + $0x80] sm:$0xff] }
 0x146   :  { %2623 = vmatprep.subr.msk.mxu0 %vm1153_vm2, %v2622_v29  ;;  %v2617_v8 = vld [vmem:[%s4398_s3 + $0x340] sm:$0xff]  ;;  %v1105_v29 = vld [vmem:[%s4398_s3 + $0x68] sm:$0xff] }
 0x149   :  { %1027 = vrot.lane.b32.xlu1 %v980_v36, %s2791_s1  ;;  %v2615_v36 = vld [vmem:[%s4398_s3 + $0x330] sm:$0xff] }
 0x19b   :  { %v998_v56 = vpop.permute.xlu0 %997 }
 0x19f   :  { %v1002_v26 = vpop.permute.xlu1 %1001  ;;  %v1000_v18 = vpop.permute.xlu0 %999 }
 0x1a0   :  { %v1030_v9 = vsel %vm1029_vm3, %v998_v56, %v1000_v18 }
 0x1a1   :  { %v1046_v1 = vmax.f32 %v965_v45, %v1030_v9  ;;  %v1104_v9 = vld [vmem:[%s4398_s3 + $0x60] sm:$0xff] }
 0x1a3   :  { %1055 = vst.msk [vmem:[#allocation2] sm:$0xff] %vm1054_vm1, %v1046_v1  ;;  %v1004_v32 = vpop.permute.xlu1 %1003  ;;  %v1006_v10 = vpop.permute.xlu0 %1005  ;;  %v2614_v1 = vld [vmem:[%s4398_s3 + $0x328] sm:$0xff] }
 0x1a4   :  { %v1031_v37 = vsel %vm1029_vm3, %v1002_v26, %v1004_v32  ;;  %v1103_v32 = vld [vmem:[%s4398_s3 + $0x58] sm:$0xff] }
 0x1a5   :  { %v1047_v35 = vmax.f32 %v967_v39, %v1031_v37  ;;  %v1102_v37 = vld [vmem:[%s4398_s3 + $0x50] sm:$0xff] }
 0x1a7   :  { %1056 = vst.msk [vmem:[#allocation2 + $0x8] sm:$0xff] %vm1054_vm1, %v1047_v35  ;;  %v1008_v2 = vpop.permute.xlu1 %1007  ;;  %v1010_v47 = vpop.permute.xlu0 %1009  ;;  %v2612_v35 = vld [vmem:[%s4398_s3 + $0x318] sm:$0xff] }
 0x1a8   :  { %v1032_v12 = vsel %vm1029_vm3, %v1006_v10, %v1008_v2  ;;  %v2613_v10 = vld [vmem:[%s4398_s3 + $0x320] sm:$0xff]  ;;  %v1101_v2 = vld [vmem:[%s4398_s3 + $0x48] sm:$0xff] }
 0x1a9   :  { %v1048_v58 = vmax.f32 %v969_v55, %v1032_v12  ;;  %v1100_v12 = vld [vmem:[%s4398_s3 + $0x40] sm:$0xff] }
 0x1ab   :  { %1057 = vst.msk [vmem:[#allocation2 + $0x10] sm:$0xff] %vm1054_vm1, %v1048_v58  ;;  %v1012_v50 = vpop.permute.xlu1 %1011  ;;  %v1014_v45 = vpop.permute.xlu0 %1013  ;;  %v2610_v58 = vld [vmem:[%s4398_s3 + $0x308] sm:$0xff] }
 0x1ac   :  { %v1033_v3 = vsel %vm1029_vm3, %v1010_v47, %v1012_v50  ;;  %v2611_v47 = vld [vmem:[%s4398_s3 + $0x310] sm:$0xff]  ;;  %v1099_v50 = vld [vmem:[%s4398_s3 + $0x38] sm:$0xff] }
 0x1ad   :  { %v1049_v20 = vmax.f32 %v971_v38, %v1033_v3 }
 0x1ae   :  { %v1063_v46 = vld [vmem:[#allocation2] ss:$2 sm:$0xff]  ;;  %v1067_v39 = vld [vmem:[#allocation2 + $0x1] ss:$2 sm:$0xff] }
 0x1af   :  { %v1070_v34 = vmax.f32 %v1063_v46, %v1067_v39  ;;  %1058 = vst.msk [vmem:[#allocation2 + $0x18] sm:$0xff] %vm1054_vm1, %v1049_v20  ;;  %v1016_v48 = vpop.permute.xlu1 %1015  ;;  %v1018_v13 = vpop.permute.xlu0 %1017  ;;  %v1098_v20 = vld [vmem:[%s4398_s3 + $0x30] sm:$0xff]  ;;  %v2608_v39 = vld [vmem:[%s4398_s3 + $0x2f8] sm:$0xff] }
 0x1b0   :  { %v1034_v14 = vsel %vm1029_vm3, %v1014_v45, %v1016_v48  ;;  %v2609_v45 = vld [vmem:[%s4398_s3 + $0x300] sm:$0xff]  ;;  %v2607_v48 = vld [vmem:[%s4398_s3 + $0x2f0] sm:$0xff] }
 0x1b1   :  { %1072 = vst.msk [vmem:[#allocation3] sm:$0xff] %vm1054_vm1, %v1070_v34  ;;  %v1050_v42 = vmax.f32 %v973_v43, %v1034_v14  ;;  %v1097_v34 = vld [vmem:[%s4398_s3 + $0x28] sm:$0xff] }
 0x1b2   :  { %v2606_v14 = vld [vmem:[%s4398_s3 + $0x2e8] sm:$0xff] }
 0x1b3   :  { %1059 = vst.msk [vmem:[#allocation2 + $0x20] sm:$0xff] %vm1054_vm1, %v1050_v42  ;;  %v1020_v55 = vpop.permute.xlu1 %1019  ;;  %v1022_v51 = vpop.permute.xlu0 %1021  ;;  %v1095_v42 = vld [vmem:[%s4398_s3 + $0x18] sm:$0xff] }
 0x1b4   :  { %v1035_v11 = vsel %vm1029_vm3, %v1018_v13, %v1020_v55  ;;  %v1096_v13 = vld [vmem:[%s4398_s3 + $0x20] sm:$0xff] }
 0x1b5   :  { %v1051_v38 = vmax.f32 %v975_v57, %v1035_v11  ;;  %v2605_v55 = vld [vmem:[%s4398_s3 + $0x2e0] sm:$0xff]  ;;  %v1094_v11 = vld [vmem:[%s4398_s3 + $0x10] sm:$0xff] }
 0x1b6   :  { %v1065_v15 = vld [vmem:[#allocation2 + $0x10] ss:$2 sm:$0x3f]  ;;  %v1069_v59 = vld [vmem:[#allocation2 + $0x11] ss:$2 sm:$0x3f] }
 0x1b7   :  { %v1071_v60 = vmax.f32 %v1065_v15, %v1069_v59  ;;  %1060 = vst.msk [vmem:[#allocation2 + $0x28] sm:$0xff] %vm1054_vm1, %v1051_v38  ;;  %v1024_v22 = vpop.permute.xlu1 %1023  ;;  %v1026_v43 = vpop.permute.xlu0 %1025  ;;  %v1093_v15 = vld [vmem:[%s4398_s3 + $0x8] sm:$0xff] }
 0x1b8   :  { %v1036_v31 = vsel %vm1029_vm3, %v1022_v51, %v1024_v22  ;;  %v2604_v51 = vld [vmem:[%s4398_s3 + $0x2d8] sm:$0xff]  ;;  %v1092_v22 = vld [vmem:[%s4398_s3] sm:$0xff] }
 0x1b9   :  { %1074 = vst.msk [vmem:[#allocation3 + $0x8] sm:$0x3f] %vm1073_vm4, %v1071_v60  ;;  %v1052_v41 = vmax.f32 %v977_v28, %v1036_v31  ;;  %v2621_v28 = vld [vmem:[%s4398_s3 + $0x360] sm:$0xf]  ;;  %v2603_v60 = vld [vmem:[%s4398_s3 + $0x2d0] sm:$0xff]  ;;  %v2602_v31 = vld [vmem:[%s4398_s3 + $0x2c8] sm:$0xff] }
 0x1bb   :  { %1061 = vst.msk [vmem:[#allocation2 + $0x30] sm:$0xff] %vm1054_vm1, %v1052_v41  ;;  %v1028_v17 = vpop.permute.xlu1 %1027  ;;  %v2594_v41 = vld [vmem:[%s4398_s3 + $0x2b8] sm:$0xf] }
 0x1bc   :  { %v1037_v44 = vsel %vm1029_vm3, %v1026_v43, %v1028_v17  ;;  %v2601_v43 = vld [vmem:[%s4398_s3 + $0x2c0] sm:$0xff]  ;;  %v2593_v17 = vld [vmem:[%s4398_s3 + $0x2b0] sm:$0xf]  ;;  %vm1920_vm3 = vmor %vm1919_vm11, %vm1918_vm10 }
 0x1bd   :  { %v1053_v57 = vmax.f32 %v979_v25, %v1037_v44  ;;  %v1107_v25 = vld [vmem:[%s4398_s3 + $0x78] sm:$0xff]  ;;  %v1088_v44 = vld [vmem:[#allocation3] sm:$0xff] }
 0x1be   :  { %v1076_v40 = vld [vmem:[#allocation2 + $0x20] ss:$2 sm:$0xff]  ;;  %v1080_v5 = vld [vmem:[#allocation2 + $0x21] ss:$2 sm:$0xff] }
 0x1bf   :  { %1062 = vst.msk [vmem:[#allocation2 + $0x38] sm:$0xff] %vm1054_vm1, %v1053_v57  ;;  %v1083_v62 = vmax.f32 %v1076_v40, %v1080_v5  ;;  %v2592_v57 = vld [vmem:[%s4398_s3 + $0x2a8] sm:$0xff]  ;;  %v2591_v5 = vld [vmem:[%s4398_s3 + $0x2a0] sm:$0xff] }
 0x1c0   :  { %v1114_v24 = vld [vmem:[#allocation3 + $0x1] sm:$0xff] }
 0x1c1   :  { %v1356_v19 = vld [vmem:[#allocation3 + $0x2] sm:$0xff]  ;;  %2535 = vmatmul.mubr.msk.f32.vlgmr.msra.gmra.mxu1 %vm1054_vm1, %v1114_v24  ;;  %1085 = vst.msk [vmem:[#allocation3 + $0xe] sm:$0xff] %vm1054_vm1, %v1083_v62 }
 0x1c2   :  { %2569 = vmatmul.mubr.msk.f32.vlgmr.msra.gmra.mxu0 %vm1054_vm1, %v1356_v19  ;;  %2540 = vmatpush1.msk.msra.mxu1 %vm1153_vm2, %v1112_v61  ;;  %v1640_v40 = vld [vmem:[#allocation3 + $0x4] sm:$0xff]  ;;  %v2590_v61 = vld [vmem:[%s4398_s3 + $0x298] sm:$0xff] }
 0x1c3   :  { %2624 = vmatpush1.msk.msra.mxu0 %vm1153_vm2, %v2621_v28  ;;  %1279 = vmatprep.subr.mxu1 %v1111_v52  ;;  %v2589_v52 = vld [vmem:[%s4398_s3 + $0x290] sm:$0xff]  ;;  %v2588_v62 = vld [vmem:[%s4398_s3 + $0x288] sm:$0xff]  ;;  %v2587_v19 = vld [vmem:[%s4398_s3 + $0x280] sm:$0xff] }
 0x1c4   :  { %1697 = vmatprep.subr.mxu0 %v2620_v53  ;;  %1280 = vmatpush1.msra.mxu1 %v1110_v54  ;;  %v2586_v53 = vld [vmem:[%s4398_s3 + $0x278] sm:$0xff]  ;;  %v2585_v54 = vld [vmem:[%s4398_s3 + $0x270] sm:$0xff] }
 0x1c5   :  { %1698 = vmatpush1.msra.mxu0 %v2619_v16  ;;  %1281 = vmatprep.subr.mxu1 %v1109_v21  ;;  %v2584_v21 = vld [vmem:[%s4398_s3 + $0x268] sm:$0xff] }
 0x1c6   :  { %1699 = vmatprep.subr.mxu0 %v2618_v6  ;;  %v1078_v0 = vld [vmem:[#allocation2 + $0x30] ss:$2 sm:$0x3f]  ;;  %v1082_v27 = vld [vmem:[#allocation2 + $0x31] ss:$2 sm:$0x3f]  ;;  %1282 = vmatpush1.msra.mxu1 %v1108_v7 }
 0x1c7   :  { %1230 = vmatprep.mubr.f32.mxu1 %v4416_v4  ;;  %1283 = vmatprep.subr.mxu1 %v1107_v25  ;;  %v1084_v56 = vmax.f32 %v1078_v0, %v1082_v27  ;;  %v2583_v7 = vld [vmem:[%s4398_s3 + $0x260] sm:$0xff]  ;;  %v2582_v25 = vld [vmem:[%s4398_s3 + $0x258] sm:$0xff]  ;;  %v2580_v0 = vld [vmem:[%s4398_s3 + $0x248] sm:$0xff] }
 0x1c8   :  { %1471 = vmatprep.mubr.f32.mxu0 %v4416_v4  ;;  %1700 = vmatpush1.msra.mxu0 %v2617_v8  ;;  %v1115_v26 = vld [vmem:[#allocation3 + $0x9] sm:$0xff]  ;;  %v1643_v27 = vld [vmem:[#allocation3 + $0x1c] sm:$0xf] }
 0x1c9   :  { %1284 = vmatpush1.msra.mxu1 %v1106_v63  ;;  %v1357_v18 = vld [vmem:[#allocation3 + $0xa] sm:$0xff]  ;;  %1086 = vst.msk [vmem:[#allocation3 + $0x16] sm:$0x3f] %vm1073_vm4, %v1084_v56  ;;  %1701 = vmatprep.subr.mxu0 %v2616_v49  ;;  %v2579_v49 = vld [vmem:[%s4398_s3 + $0x240] sm:$0xff]  ;;  %vm1938_vm4 = vcmask 523264  }
 0x1ca   :  { %2536 = vmatmul.mubr.msk.f32.gmra.mxu1 %vm1054_vm1, %v1115_v26  ;;  %2570 = vmatmul.mubr.msk.f32.gmra.mxu0 %vm1054_vm1, %v1357_v18  ;;  %v1089_v28 = vld [vmem:[#allocation3 + $0x8] sm:$0xff]  ;;  %v2581_v8 = vld [vmem:[%s4398_s3 + $0x250] sm:$0xff]  ;;  %v2575_v26 = vld [vmem:[%s4398_s3 + $0x220] sm:$0xff] }
 0x1cb   :  { %1285 = vmatprep.subr.mxu1 %v1105_v29  ;;  %1702 = vmatpush1.msra.mxu0 %v2615_v36  ;;  %v1641_v24 = vld [vmem:[#allocation3 + $0xc] sm:$0xff]  ;;  %v2578_v29 = vld [vmem:[%s4398_s3 + $0x238] sm:$0xff] }
 0x1cc   :  { %1286 = vmatpush1.msra.mxu1 %v1104_v9  ;;  %1703 = vmatprep.subr.mxu0 %v2614_v1  ;;  %v2577_v36 = vld [vmem:[%s4398_s3 + $0x230] sm:$0xff]  ;;  %v2576_v56 = vld [vmem:[%s4398_s3 + $0x228] sm:$0xff]  ;;  %v2574_v18 = vld [vmem:[%s4398_s3 + $0x218] sm:$0xff] }
 0x1cd   :  { %1287 = vmatprep.subr.mxu1 %v1103_v32  ;;  %1704 = vmatpush1.msra.mxu0 %v2613_v10  ;;  %v2573_v9 = vld [vmem:[%s4398_s3 + $0x210] sm:$0xff]  ;;  %v1498_v1 = vld [vmem:[#allocation3 + $0x3] sm:$0xff] }
 0x1ce   :  { %1288 = vmatpush1.msra.mxu1 %v1102_v37  ;;  %1705 = vmatprep.subr.mxu0 %v2612_v35  ;;  %v1499_v32 = vld [vmem:[#allocation3 + $0xb] sm:$0xff] }
 0x1cf   :  { %1289 = vmatprep.subr.mxu1 %v1101_v2  ;;  %1706 = vmatpush1.msra.mxu0 %v2611_v47 }
 0x1d0   :  { %1290 = vmatpush1.msra.mxu1 %v1100_v12  ;;  %1707 = vmatprep.subr.mxu0 %v2610_v58  ;;  %v1116_v3 = vld [vmem:[#allocation3 + $0x11] sm:$0xff]  ;;  %v1117_v38 = vld [vmem:[#allocation3 + $0x19] sm:$0xf] }
 0x1d1   :  { %1236 = vmatprep.mubr.f32.mxu1 %v4416_v4  ;;  %v1358_v46 = vld [vmem:[#allocation3 + $0x12] sm:$0xff]  ;;  %1291 = vmatprep.subr.mxu1 %v1099_v50  ;;  %v1359_v59 = vld [vmem:[#allocation3 + $0x1a] sm:$0xf] }
 0x1d2   :  { %1477 = vmatprep.mubr.f32.mxu0 %v4416_v4  ;;  %1708 = vmatpush1.msra.mxu0 %v2609_v45  ;;  %v1090_v16 = vld [vmem:[#allocation3 + $0x10] sm:$0xff]  ;;  %v1091_v63 = vld [vmem:[#allocation3 + $0x18] sm:$0xf] }
 0x1d3   :  { %2537 = vmatmul.mubr.msk.f32.gmra.mxu1 %vm1054_vm1, %v1116_v3  ;;  %2571 = vmatmul.mubr.msk.f32.gmra.mxu0 %vm1054_vm1, %v1358_v46  ;;  %v1642_v6 = vld [vmem:[#allocation3 + $0x14] sm:$0xff] }
 0x1d4   :  { %1292 = vmatpush1.msra.mxu1 %v1098_v20  ;;  %1709 = vmatprep.subr.mxu0 %v2608_v39  ;;  %v1500_v10 = vld [vmem:[#allocation3 + $0x13] sm:$0xff]  ;;  %v1501_v37 = vld [vmem:[#allocation3 + $0x1b] sm:$0xf] }
 0x1d5   :  { %1293 = vmatprep.subr.mxu1 %v1097_v34  ;;  %1710 = vmatpush1.msra.mxu0 %v2607_v48 }
 0x1d6   :  { %1294 = vmatpush1.msra.mxu1 %v1096_v13  ;;  %1711 = vmatprep.subr.mxu0 %v2606_v14 }
 0x1d7   :  { %1242 = vmatprep.mubr.f32.mxu1 %v4416_v4  ;;  %1295 = vmatprep.subr.mxu1 %v1095_v42 }
 0x1d8   :  { %1483 = vmatprep.mubr.f32.mxu0 %v4416_v4  ;;  %1712 = vmatpush1.msra.mxu0 %v2605_v55 }
 0x1d9   :  { %2538 = vmatmul.mubr.msk.f32.gmra.mxu1 %vm1054_vm1, %v1117_v38  ;;  %2572 = vmatmul.mubr.msk.f32.gmra.mxu0 %vm1054_vm1, %v1359_v59 }
 0x1da   :  { %1296 = vmatpush1.msra.mxu1 %v1094_v11  ;;  %1713 = vmatprep.subr.mxu0 %v2604_v51 }
 0x1db   :  { %1297 = vmatprep.subr.mxu1 %v1093_v15  ;;  %1714 = vmatpush1.msra.mxu0 %v2603_v60 }
 0x1dc   :  { %1298 = vmatpush1.msra.mxu1 %v1092_v22  ;;  %1715 = vmatprep.subr.mxu0 %v2602_v31 }
 0x1dd   :  { %1331 = vmatprep.mubr.f32.mxu1 %v4416_v4  ;;  %2595 = vmatprep.subr.msk.mxu1 %vm1153_vm2, %v2594_v41 }
 0x1de   :  { %1716 = vmatpush1.msra.mxu0 %v2601_v43  ;;  %1749 = vmatprep.mubr.f32.mxu0 %v4416_v4 }
 0x1df   :  { %2541 = vmatmul.mubr.msk.f32.vlgmr.msra.gmra.mxu1 %vm1054_vm1, %v1088_v44  ;;  %2625 = vmatmul.mubr.msk.f32.vlgmr.msra.gmra.mxu0 %vm1054_vm1, %v1640_v40 }
 0x1e0   :  { %2596 = vmatpush1.msk.msra.mxu1 %vm1153_vm2, %v2593_v17  ;;  %1337 = vmatprep.mubr.f32.mxu1 %v4416_v4 }
 0x1e1   :  { %1555 = vmatprep.subr.mxu1 %v2592_v57  ;;  %1755 = vmatprep.mubr.f32.mxu0 %v4416_v4 }
 0x1e2   :  { %1556 = vmatpush1.msra.mxu1 %v2591_v5  ;;  %2097 = vmatprep.subr.mxu0 %v4416_v4 }
 0x1e3   :  { %1557 = vmatprep.subr.mxu1 %v2590_v61  ;;  %2542 = vmatmul.mubr.msk.f32.gmra.mxu1 %vm1054_vm1, %v1089_v28 }
 0x1e4   :  { %1558 = vmatpush1.msra.mxu1 %v2589_v52  ;;  %2626 = vmatmul.mubr.msk.f32.gmra.mxu0 %vm1054_vm1, %v1641_v24  ;;  %v1782_v52 = vld [vmem:[%s4399_s4] sm:$0x3]  ;;  %s2792_s4 = smov 48  }
 0x1e5   :  { %1559 = vmatprep.subr.mxu1 %v2588_v62  ;;  %1343 = vmatprep.mubr.f32.mxu1 %v4416_v4 }
 0x1e6   :  { %1560 = vmatpush1.msra.mxu1 %v2587_v19  ;;  %1761 = vmatprep.mubr.f32.mxu0 %v4416_v4 }
 0x1e7   :  { %1561 = vmatprep.subr.mxu1 %v2586_v53  ;;  %2543 = vmatmul.mubr.msk.f32.gmra.mxu1 %vm1054_vm1, %v1090_v16  ;;  %v1787_v16 = vrot.slane %v1782_v52, %v941_v30 }
 0x1e8   :  { %1562 = vmatpush1.msra.mxu1 %v2585_v54  ;;  %2627 = vmatmul.mubr.msk.f32.gmra.mxu0 %vm1054_vm1, %v1642_v6  ;;  %v1791_v6 = vrot.slane %v1782_v52, %v945_v33  ;;  %v1991_v52 = vld [vmem:[%s4400_s5 + $0x168] sm:$0xff] }
 0x1e9   :  { %1563 = vmatprep.subr.mxu1 %v2584_v21  ;;  %1349 = vmatprep.mubr.f32.mxu1 %v4416_v4 }
 0x1ea   :  { %1564 = vmatpush1.msra.mxu1 %v2583_v7  ;;  %1767 = vmatprep.mubr.f32.mxu0 %v4416_v4 }
 0x1eb   :  { %1565 = vmatprep.subr.mxu1 %v2582_v25  ;;  %2544 = vmatmul.mubr.msk.f32.gmra.mxu1 %vm1054_vm1, %v1091_v63 }
 0x1ec   :  { %1566 = vmatpush1.msra.mxu1 %v2581_v8  ;;  %1607 = vmatprep.mubr.f32.mxu1 %v4416_v4 }
 0x1ed   :  { %1567 = vmatprep.subr.mxu1 %v2580_v0  ;;  %2628 = vmatmul.mubr.msk.f32.gmra.mxu0 %vm1054_vm1, %v1643_v27 }
 0x1ee   :  { %1568 = vmatpush1.msra.mxu1 %v2579_v49 }
 0x1ef   :  { %1569 = vmatprep.subr.mxu1 %v2578_v29 }
 0x1f0   :  { %1570 = vmatpush1.msra.mxu1 %v2577_v36 }
 0x1f1   :  { %1571 = vmatprep.subr.mxu1 %v2576_v56 }
 0x1f2   :  { %1572 = vmatpush1.msra.mxu1 %v2575_v26 }
 0x1f3   :  { %1573 = vmatprep.subr.mxu1 %v2574_v18 }
 0x1f4   :  { %1574 = vmatpush1.msra.mxu1 %v2573_v9 }
 0x1f5   :  { %2597 = vmatmul.mubr.msk.f32.vlgmr.msra.gmra.mxu1 %vm1054_vm1, %v1498_v1 }
 0x1f6   :  { %1613 = vmatprep.mubr.f32.mxu1 %v4416_v4 }
 0x1f9   :  { %2598 = vmatmul.mubr.msk.f32.gmra.mxu1 %vm1054_vm1, %v1499_v32 }
 0x1fa   :  { %1619 = vmatprep.mubr.f32.mxu1 %v4416_v4 }
 0x1fd   :  { %2599 = vmatmul.mubr.msk.f32.gmra.mxu1 %vm1054_vm1, %v1500_v10 }
 0x1fe   :  { %1625 = vmatprep.mubr.f32.mxu1 %v4416_v4 }
 0x201   :  { %2600 = vmatmul.mubr.msk.f32.gmra.mxu1 %vm1054_vm1, %v1501_v37 }
 0x281   :  { %v1226_v35 = vpop.f32.mrf.mxu1 }
 0x282   :  { %v1467_v47 = vpop.f32.mrf.mxu0 }
 0x283   :  { %v1228_v2 = vpop.f32.mrf.mxu1 }
 0x284   :  { %v1469_v58 = vpop.f32.mrf.mxu0 }
 0x28a   :  { %v1232_v12 = vpop.f32.mrf.mxu1  ;;  %v1473_v45 = vpop.f32.mrf.mxu0 }
 0x28c   :  { %v1234_v50 = vpop.f32.mrf.mxu1  ;;  %v1475_v46 = vpop.f32.mrf.mxu0 }
 0x293   :  { %v1238_v3 = vpop.f32.mrf.mxu1  ;;  %v1479_v39 = vpop.f32.mrf.mxu0 }
 0x295   :  { %v1240_v20 = vpop.f32.mrf.mxu1  ;;  %v1481_v13 = vpop.f32.mrf.mxu0 }
 0x299   :  { %v1244_v34 = vpop.f32.mrf.mxu1  ;;  %v1485_v42 = vpop.f32.mrf.mxu0 }
 0x29b   :  { %v1246_v48 = vpop.f32.mrf.mxu1  ;;  %v1487_v38 = vpop.f32.mrf.mxu0 }
 0x29f   :  { %v1333_v14 = vpop.f32.mrf.mxu1  ;;  %v1751_v59 = vpop.f32.mrf.mxu0 }
 0x2a0   :  { %v1334_v57 = vadd.f32 %v1333_v14, %v1226_v35 }
 0x2a1   :  { %v1335_v55 = vpop.f32.mrf.mxu1  ;;  %v1753_v41 = vpop.f32.mrf.mxu0 }
 0x2a2   :  { %v1336_v61 = vadd.f32 %v1335_v55, %v1228_v2  ;;  %v1490_v28 = vadd.f32 %v1467_v47, %v1334_v57  ;;  %v1961_v57 = vld [vmem:[%s4400_s5 + $0x78] sm:$0xff] }
 0x2a3   :  { %v1339_v11 = vpop.f32.mrf.mxu1 }
 0x2a4   :  { %v1757_v5 = vpop.f32.mrf.mxu0  ;;  %v1340_v62 = vadd.f32 %v1339_v11, %v1232_v12  ;;  %v1491_v54 = vadd.f32 %v1469_v58, %v1336_v61  ;;  %v1960_v61 = vld [vmem:[%s4400_s5 + $0x70] sm:$0xff] }
 0x2a5   :  { %v1341_v51 = vpop.f32.mrf.mxu1 }
 0x2a6   :  { %v1759_v24 = vpop.f32.mrf.mxu0  ;;  %v1342_v7 = vadd.f32 %v1341_v51, %v1234_v50  ;;  %v1492_v27 = vadd.f32 %v1473_v45, %v1340_v62  ;;  %v1959_v62 = vld [vmem:[%s4400_s5 + $0x68] sm:$0xff] }
 0x2a7   :  { %v1345_v15 = vpop.f32.mrf.mxu1 }
 0x2a8   :  { %v1346_v25 = vadd.f32 %v1345_v15, %v1238_v3  ;;  %v1763_v0 = vpop.f32.mrf.mxu0  ;;  %v1493_v9 = vadd.f32 %v1475_v46, %v1342_v7  ;;  %v1972_v7 = vld [vmem:[%s4400_s5 + $0xd0] sm:$0xff] }
 0x2a9   :  { %v1347_v60 = vpop.f32.mrf.mxu1 }
 0x2aa   :  { %v1348_v29 = vadd.f32 %v1347_v60, %v1240_v20  ;;  %v1494_v1 = vadd.f32 %v1479_v39, %v1346_v25  ;;  %v1765_v10 = vpop.f32.mrf.mxu0  ;;  %v1956_v25 = vld [vmem:[%s4400_s5 + $0x50] sm:$0xff] }
 0x2ab   :  { %v1351_v22 = vpop.f32.mrf.mxu1 }
 0x2ac   :  { %v1352_v31 = vadd.f32 %v1351_v22, %v1244_v34  ;;  %v1495_v2 = vadd.f32 %v1481_v13, %v1348_v29 }
 0x2ad   :  { %v1353_v43 = vpop.f32.mrf.mxu1  ;;  %v1769_v50 = vpop.f32.mrf.mxu0 }
 0x2ae   :  { %v1354_v17 = vadd.f32 %v1353_v43, %v1246_v48  ;;  %v1496_v44 = vadd.f32 %v1485_v42, %v1352_v31 }
 0x2af   :  { %v1771_v42 = vpop.f32.mrf.mxu0 }
 0x2b0   :  { %v1497_v40 = vadd.f32 %v1487_v38, %v1354_v17  ;;  %v1993_v17 = vld [vmem:[%s4400_s5 + $0x178] sm:$0xff] }
 0x2b1   :  { %2098 = vmatpush1.msra.mxu0 %v1993_v17 }
 0x2b2   :  { %2099 = vmatprep.subr.mxu0 %v4416_v4 }
 0x2b5   :  { %v1609_v19 = vpop.f32.mrf.mxu1 }
 0x2b6   :  { %v1632_v53 = vadd.f32 %v1609_v19, %v1490_v28  ;;  %v1975_v28 = vld [vmem:[%s4400_s5 + $0xe8] sm:$0xff]  ;;  %v1974_v19 = vld [vmem:[%s4400_s5 + $0xe0] sm:$0xff] }
 0x2b7   :  { %v1611_v21 = vpop.f32.mrf.mxu1 }
 0x2b8   :  { %v1774_v8 = vadd.f32 %v1751_v59, %v1632_v53  ;;  %v1633_v63 = vadd.f32 %v1611_v21, %v1491_v54  ;;  %v1958_v53 = vld [vmem:[%s4400_s5 + $0x60] sm:$0xff]  ;;  %v1989_v54 = vld [vmem:[%s4400_s5 + $0x158] sm:$0xff] }
 0x2b9   :  { %v1615_v49 = vpop.f32.mrf.mxu1  ;;  %v1957_v21 = vld [vmem:[%s4400_s5 + $0x58] sm:$0xff] }
 0x2ba   :  { %v1775_v36 = vadd.f32 %v1753_v41, %v1633_v63  ;;  %v4056_v56 = vadd.f32 %v1787_v16, %v1774_v8  ;;  %v1634_v26 = vadd.f32 %v1615_v49, %v1492_v27  ;;  %v1987_v8 = vld [vmem:[%s4400_s5 + $0x148] sm:$0xff] }
 0x2bb   :  { %v1617_v18 = vpop.f32.mrf.mxu1 }
 0x2bc   :  { %v1802_v30 = vmax.f32 %v4056_v56, 0.0  ;;  %v1795_v32 = vadd.f32 %v1791_v6, %v1775_v36  ;;  %v1635_v37 = vadd.f32 %v1617_v18, %v1493_v9  ;;  %v1776_v12 = vadd.f32 %v1757_v5, %v1634_v26  ;;  %v1976_v5 = vld [vmem:[%s4400_s5 + $0xf0] sm:$0xff]  ;;  %v1971_v56 = vld [vmem:[%s4400_s5 + $0xc8] sm:$0xff] }
 0x2bd   :  { %v1621_v33 = vpop.f32.mrf.mxu1  ;;  %v2793_v9 = vmov 1983009808  }
 0x2be   :  { %v1636_v35 = vadd.f32 %v1621_v33, %v1494_v1  ;;  %1818 = vrot.lane.b32.xlu0 %v1802_v30, %s2792_s4  ;;  %v1803_v47 = vmax.f32 %v1795_v32, 0.0  ;;  %v1777_v46 = vadd.f32 %v1759_v24, %v1635_v37  ;;  %v4065_v55 = vadd.f32 %v1787_v16, %v1776_v12  ;;  %v1990_v24 = vld [vmem:[%s4400_s5 + $0x160] sm:$0xff]  ;;  %v1955_v33 = vld [vmem:[%s4400_s5 + $0x48] sm:$0xff] }
 0x2bf   :  { %v1623_v58 = vpop.f32.mrf.mxu1  ;;  %v1866_v1 = vunpack.c.l.s4 %v2793_v9  ;;  %v1986_v37 = vld [vmem:[%s4400_s5 + $0x140] sm:$0xff] }
 0x2c0   :  { %v1778_v45 = vadd.f32 %v1763_v0, %v1636_v35  ;;  %v1637_v3 = vadd.f32 %v1623_v58, %v1495_v2  ;;  %1820 = vrot.lane.b32.xlu1 %v1803_v47, %s2792_s4  ;;  %v1797_v22 = vadd.f32 %v1791_v6, %v1777_v46  ;;  %v1804_v41 = vmax.f32 %v4065_v55, 0.0  ;;  %v1970_v47 = vld [vmem:[%s4400_s5 + $0xc0] sm:$0xff]  ;;  %v1985_v58 = vld [vmem:[%s4400_s5 + $0x138] sm:$0xff]  ;;  %v1968_v46 = vld [vmem:[%s4400_s5 + $0xb0] sm:$0xff] }
 0x2c1   :  { %v1627_v20 = vpop.f32.mrf.mxu1  ;;  %v1867_v2 = vunpack.c.0.s8 %v1866_v1  ;;  %v1954_v12 = vld [vmem:[%s4400_s5 + $0x40] sm:$0xff] }
 0x2c2   :  { %v1779_v39 = vadd.f32 %v1765_v10, %v1637_v3  ;;  %v1638_v34 = vadd.f32 %v1627_v20, %v1496_v44  ;;  %v4063_v48 = vadd.f32 %v1787_v16, %v1778_v45  ;;  %v1805_v43 = vmax.f32 %v1797_v22, 0.0  ;;  %v1977_v44 = vld [vmem:[%s4400_s5 + $0xf8] sm:$0xff]  ;;  %v1984_v3 = vld [vmem:[%s4400_s5 + $0x130] sm:$0xff] }
 0x2c3   :  { %v1629_v14 = vpop.f32.mrf.mxu1  ;;  %2636 = vmatprep.subr.mxu1 %v1977_v44  ;;  %v1953_v45 = vld [vmem:[%s4400_s5 + $0x38] sm:$0xff]  ;;  %v4187_v20 = vsub.s32 %v1867_v2, %v3484_v23 }
 0x2c4   :  { %v1639_v11 = vadd.f32 %v1629_v14, %v1497_v40  ;;  %v1780_v13 = vadd.f32 %v1769_v50, %v1638_v34  ;;  %v1806_v38 = vmax.f32 %v4063_v48, 0.0  ;;  %v1799_v51 = vadd.f32 %v1791_v6, %v1779_v39  ;;  %v1992_v40 = vld [vmem:[%s4400_s5 + $0x170] sm:$0xff]  ;;  %2637 = vmatpush3.msra.mxu1 %v1961_v57  ;;  %v1969_v50 = vld [vmem:[%s4400_s5 + $0xb8] sm:$0xff] }
 0x2c5   :  { %2100 = vmatpush1.msra.mxu0 %v1992_v40  ;;  %2638 = vmatprep.subr.mxu1 %v1976_v5  ;;  %v1951_v5 = vld [vmem:[%s4400_s5 + $0x28] sm:$0xff] }
 0x2c6   :  { %v4068_v15 = vadd.f32 %v1787_v16, %v1780_v13  ;;  %v1781_v59 = vadd.f32 %v1771_v42, %v1639_v11  ;;  %1826 = vrot.lane.b32.xlu0 %v1806_v38, %s2792_s4  ;;  %v1807_v60 = vmax.f32 %v1799_v51, 0.0  ;;  %2101 = vmatprep.subr.mxu0 %v4416_v4  ;;  %v1973_v16 = vld [vmem:[%s4400_s5 + $0xd8] sm:$0xff]  ;;  %v1952_v51 = vld [vmem:[%s4400_s5 + $0x30] sm:$0xff] }
 0x2c7   :  { %2639 = vmatpush3.msra.mxu1 %v1960_v61  ;;  %2102 = vmatpush1.msra.mxu0 %v1991_v52  ;;  %v1982_v61 = vld [vmem:[%s4400_s5 + $0x120] sm:$0xff] }
 0x2c8   :  { %v4073_v31 = vadd.f32 %v1791_v6, %v1781_v59  ;;  %1828 = vrot.lane.b32.xlu1 %v1807_v60, %s2792_s4  ;;  %2640 = vmatprep.subr.mxu1 %v1975_v28  ;;  %v1988_v6 = vld [vmem:[%s4400_s5 + $0x150] sm:$0xff]  ;;  %v1983_v59 = vld [vmem:[%s4400_s5 + $0x128] sm:$0xff]  ;;  %v1966_v52 = vld [vmem:[%s4400_s5 + $0xa0] sm:$0xff] }
 0x2c9   :  { %2103 = vmatprep.subr.mxu0 %v4416_v4  ;;  %2641 = vmatpush3.msra.mxu1 %v1959_v62  ;;  %v1967_v60 = vld [vmem:[%s4400_s5 + $0xa8] sm:$0xff] }
 0x2ca   :  { %1822 = vrot.lane.b32.xlu0 %v1804_v41, %s2792_s4  ;;  %2104 = vmatpush1.msra.mxu0 %v1990_v24  ;;  %v1950_v24 = vld [vmem:[%s4400_s5 + $0x20] sm:$0xff] }
 0x2cb   :  { %2642 = vmatprep.subr.mxu1 %v1974_v19  ;;  %2105 = vmatprep.subr.mxu0 %v4416_v4  ;;  %v1981_v19 = vld [vmem:[%s4400_s5 + $0x118] sm:$0xff] }
 0x2cc   :  { %1824 = vrot.lane.b32.xlu1 %v1805_v43, %s2792_s4  ;;  %2643 = vmatpush3.msra.mxu1 %v1958_v53  ;;  %v1965_v53 = vld [vmem:[%s4400_s5 + $0x98] sm:$0xff] }
 0x2cd   :  { %2106 = vmatpush1.msra.mxu0 %v1989_v54  ;;  %2644 = vmatprep.subr.mxu1 %v1973_v16  ;;  %v1949_v54 = vld [vmem:[%s4400_s5 + $0x18] sm:$0xff]  ;;  %v1980_v16 = vld [vmem:[%s4400_s5 + $0x110] sm:$0xff] }
 0x2ce   :  { %2107 = vmatprep.subr.mxu0 %v4416_v4  ;;  %2645 = vmatpush3.msra.mxu1 %v1957_v21  ;;  %v1964_v21 = vld [vmem:[%s4400_s5 + $0x90] sm:$0xff] }
 0x2cf   :  { %2108 = vmatpush1.msra.mxu0 %v1988_v6  ;;  %2646 = vmatprep.subr.mxu1 %v1972_v7  ;;  %v1809_v6 = vmax.f32 %v4073_v31, 0.0  ;;  %v1808_v7 = vmax.f32 %v4068_v15, 0.0  ;;  %v1963_v31 = vld [vmem:[%s4400_s5 + $0x88] sm:$0xff] }
 0x2d0   :  { %2109 = vmatprep.subr.mxu0 %v4416_v4  ;;  %2647 = vmatpush3.msra.mxu1 %v1956_v25  ;;  %v1948_v25 = vld [vmem:[%s4400_s5 + $0x10] sm:$0xff]  ;;  %v1947_v15 = vld [vmem:[%s4400_s5 + $0x8] sm:$0xff] }
 0x2d1   :  { %2110 = vmatpush1.msra.mxu0 %v1987_v8  ;;  %2648 = vmatprep.subr.mxu1 %v1971_v56  ;;  %v1979_v8 = vld [vmem:[%s4400_s5 + $0x108] sm:$0xff] }
 0x2d2   :  { %2111 = vmatprep.subr.mxu0 %v4416_v4  ;;  %2649 = vmatpush3.msra.mxu1 %v1955_v33 }
 0x2d3   :  { %2112 = vmatpush1.msra.mxu0 %v1986_v37  ;;  %2650 = vmatprep.subr.mxu1 %v1970_v47 }
 0x2d4   :  { %2113 = vmatprep.subr.mxu0 %v4416_v4  ;;  %2651 = vmatpush3.msra.mxu1 %v1954_v12 }
 0x2d5   :  { %2114 = vmatpush1.msra.mxu0 %v1985_v58  ;;  %2652 = vmatprep.subr.mxu1 %v1969_v50 }
 0x2d6   :  { %2115 = vmatprep.subr.mxu0 %v4416_v4  ;;  %2653 = vmatpush3.msra.mxu1 %v1953_v45  ;;  %v2182_v45 = vld [vmem:[%s4402_s7 + $0x70] sm:$0xff] }
 0x2d7   :  { %2116 = vmatpush1.msra.mxu0 %v1984_v3  ;;  %2654 = vmatprep.subr.mxu1 %v1968_v46  ;;  %v2181_v46 = vld [vmem:[%s4402_s7 + $0x68] sm:$0xff] }
 0x2d8   :  { %2117 = vmatprep.subr.mxu0 %v4416_v4  ;;  %2655 = vmatpush3.msra.mxu1 %v1952_v51  ;;  %v2169_v51 = vld [vmem:[%s4402_s7 + $0x8] sm:$0xff] }
 0x2d9   :  { %2118 = vmatpush1.msra.mxu0 %v1983_v59  ;;  %2656 = vmatprep.subr.mxu1 %v1967_v60  ;;  %v2168_v59 = vld [vmem:[%s4402_s7] sm:$0xff]  ;;  %v2275_v60 = vld [vmem:[%s4404_s9 + $0x50] sm:$0xf] }
 0x2da   :  { %2119 = vmatprep.subr.mxu0 %v4416_v4  ;;  %2657 = vmatpush3.msra.mxu1 %v1951_v5 }
 0x2db   :  { %2120 = vmatpush1.msra.mxu0 %v1982_v61  ;;  %2658 = vmatprep.subr.mxu1 %v1966_v52  ;;  %v2629_v52 = vld [vmem:[%s4401_s6] ss:$0 sm:$0xff] }
 0x2dc   :  { %2121 = vmatprep.subr.mxu0 %v4416_v4  ;;  %2659 = vmatpush3.msra.mxu1 %v1950_v24 }
 0x2dd   :  { %2122 = vmatpush1.msra.mxu0 %v1981_v19  ;;  %2660 = vmatprep.subr.mxu1 %v1965_v53 }
 0x2de   :  { %2123 = vmatprep.subr.mxu0 %v4416_v4  ;;  %2661 = vmatpush3.msra.mxu1 %v1949_v54 }
 0x2df   :  { %2124 = vmatpush1.msra.mxu0 %v1980_v16  ;;  %2662 = vmatprep.subr.mxu1 %v1964_v21  ;;  %v2267_v16 = vld [vmem:[%s4404_s9 + $0x10] sm:$0xff]  ;;  %v2266_v21 = vld [vmem:[%s4404_s9 + $0x8] sm:$0xff] }
 0x2e0   :  { %2125 = vmatprep.subr.mxu0 %v4416_v4  ;;  %2663 = vmatpush3.msra.mxu1 %v1948_v25 }
 0x2e1   :  { %2126 = vmatpush1.msra.mxu0 %v1979_v8  ;;  %2664 = vmatprep.subr.mxu1 %v1963_v31 }
 0x2e2   :  { %2127 = vmatprep.subr.mxu0 %v4416_v4  ;;  %2665 = vmatpush3.msra.mxu1 %v1947_v15 }
 0x330   :  { %v1819_v63 = vpop.permute.xlu0 %1818 }
 0x332   :  { %v1821_v0 = vpop.permute.xlu1 %1820 }
 0x333   :  { %v1835_v27 = vsel %vm1834_vm5, %v1819_v63, %v1821_v0  ;;  %v1978_v63 = vld [vmem:[%s4400_s5 + $0x100] sm:$0xff] }
 0x334   :  { %v1843_v49 = vmax.f32 %v1802_v30, %v1835_v27  ;;  %v1962_v0 = vld [vmem:[%s4400_s5 + $0x80] sm:$0xff]  ;;  %2128 = vmatpush1.msra.mxu0 %v1978_v63 }
 0x335   :  { %v1946_v27 = vld [vmem:[%s4400_s5] sm:$0xff]  ;;  %2666 = vmatprep.subr.mxu1 %v1962_v0  ;;  %2157 = vmatprep.subr.mxu0 %v4416_v4 }
 0x336   :  { %1848 = vst.msk [vmem:[#allocation4] sm:$0xff] %vm1847_vm6, %v1843_v49  ;;  %v1995_v49 = vld [vmem:[%s4400_s5 + $0x188] sm:$0xff]  ;;  %2667 = vmatpush3.msra.mxu1 %v1946_v27  ;;  %v2633_v63 = vld [vmem:[%s4405_s10] ss:$0 sm:$0xff] }
 0x337   :  { %2158 = vmatpush2.msra.mxu0 %v1995_v49  ;;  %2699 = vmatprep.subr.mxu1 %v4416_v4 }
 0x338   :  { %v1827_v29 = vpop.permute.xlu0 %1826  ;;  %2159 = vmatprep.subr.mxu0 %v4416_v4 }
 0x33a   :  { %v1829_v36 = vpop.permute.xlu1 %1828 }
 0x33b   :  { %v1837_v26 = vsel %vm1834_vm5, %v1827_v29, %v1829_v36  ;;  %v1994_v29 = vld [vmem:[%s4400_s5 + $0x180] sm:$0xff] }
 0x33c   :  { %v1845_v18 = vmax.f32 %v1806_v38, %v1837_v26  ;;  %v1823_v32 = vpop.permute.xlu0 %1822  ;;  %2160 = vmatpush2.msra.mxu0 %v1994_v29 }
 0x33d   :  { %2732 = vmatprep.subr.mxu0 %v4416_v4 }
 0x33e   :  { %1850 = vst.msk [vmem:[#allocation4 + $0x10] sm:$0xff] %vm1847_vm6, %v1845_v18  ;;  %v1825_v10 = vpop.permute.xlu1 %1824 }
 0x33f   :  { %v1836_v30 = vsel %vm1834_vm5, %v1823_v32, %v1825_v10  ;;  %vm1943_vm5 = vmor %vm1942_vm0, %vm1941_vm15 }
 0x340   :  { %v1844_v35 = vmax.f32 %v1804_v41, %v1836_v30 }
 0x342   :  { %1849 = vst.msk [vmem:[#allocation4 + $0x8] sm:$0xff] %vm1847_vm6, %v1844_v35 }
 0x345   :  { %v1900_v39 = vld [vmem:[#allocation4 + $0x6] ss:$14 sm:$0x3]  ;;  %v1902_v34 = vld [vmem:[#allocation4 + $0x7] ss:$14 sm:$0x3] }
 0x346   :  { %v1903_v48 = vmax.f32 %v1900_v39, %v1902_v34  ;;  %v1860_v14 = vld [vmem:[#allocation4 + $0x2] ss:$14 sm:$0x3]  ;;  %v1862_v42 = vld [vmem:[#allocation4 + $0x3] ss:$14 sm:$0x3] }
 0x347   :  { %v1863_v55 = vmax.f32 %v1860_v14, %v1862_v42  ;;  %v1882_v11 = vld [vmem:[#allocation4 + $0x4] ss:$14 sm:$0x3]  ;;  %v1884_v13 = vld [vmem:[#allocation4 + $0x5] ss:$14 sm:$0x3] }
 0x348   :  { %v1911_v23 = vrot.slane %v1903_v48, %v4187_v20  ;;  %v1885_v38 = vmax.f32 %v1882_v11, %v1884_v13  ;;  %v2179_v39 = vld [vmem:[%s4402_s7 + $0x58] sm:$0xff]  ;;  %v2178_v34 = vld [vmem:[%s4402_s7 + $0x50] sm:$0xff]  ;;  %v2177_v48 = vld [vmem:[%s4402_s7 + $0x48] sm:$0xff] }
 0x349   :  { %v1871_v22 = vrot.slane %v1863_v55, %v4187_v20  ;;  %v1923_v41 = vld [vmem:[#allocation4 + $0x8] ss:$14 sm:$0x3]  ;;  %v1925_v43 = vld [vmem:[#allocation4 + $0x9] ss:$14 sm:$0x3] }
 0x34a   :  { %1912 = vrot.lane.b32.xlu1 %v1911_v23, %s2794_s14  ;;  %v1926_v17 = vmax.f32 %v1923_v41, %v1925_v43  ;;  %v1853_v44 = vld [vmem:[#allocation4] ss:$14 sm:$0x3]  ;;  %v1855_v57 = vld [vmem:[#allocation4 + $0x1] ss:$14 sm:$0x3]  ;;  %v1893_v28 = vrot.slane %v1885_v38, %v4187_v20 }
 0x34b   :  { %1872 = vrot.lane.b32.xlu0 %v1871_v22, %s2795_s15  ;;  %v1856_v40 = vmax.f32 %v1853_v44, %v1855_v57  ;;  %v2176_v14 = vld [vmem:[%s4402_s7 + $0x40] sm:$0xff]  ;;  %v2175_v42 = vld [vmem:[%s4402_s7 + $0x38] sm:$0xff]  ;;  %v2174_v55 = vld [vmem:[%s4402_s7 + $0x30] sm:$0xff] }
 0x34c   :  { %v1934_v62 = vrot.slane %v1926_v17, %v4187_v20  ;;  %v2173_v11 = vld [vmem:[%s4402_s7 + $0x28] sm:$0xff]  ;;  %v2172_v13 = vld [vmem:[%s4402_s7 + $0x20] sm:$0xff]  ;;  %v2171_v23 = vld [vmem:[%s4402_s7 + $0x18] sm:$0xff] }
 0x34d   :  { %1858 = vst.msk [vmem:[#allocation5] sm:$0x3] %vm1857_vm7, %v1856_v40  ;;  %v2170_v38 = vld [vmem:[%s4402_s7 + $0x10] sm:$0xff]  ;;  %vm2798_vm7 = vmmov 0   ;;  %v2274_v22 = vld [vmem:[%s4404_s9 + $0x48] sm:$0xff]  ;;  %v2273_v41 = vld [vmem:[%s4404_s9 + $0x40] sm:$0xff] }
 0x34e   :  { %1894 = vrot.lane.b32.xlu1 %v1893_v28, %s2796_s26  ;;  %v2272_v43 = vld [vmem:[%s4404_s9 + $0x38] sm:$0xff]  ;;  %v2271_v17 = vld [vmem:[%s4404_s9 + $0x30] sm:$0xff]  ;;  %v2270_v44 = vld [vmem:[%s4404_s9 + $0x28] sm:$0xff] }
 0x34f   :  { %1935 = vrot.lane.b32.xlu0 %v1934_v62, %s2797_s12  ;;  %v2269_v57 = vld [vmem:[%s4404_s9 + $0x20] sm:$0xff]  ;;  %v2268_v40 = vld [vmem:[%s4404_s9 + $0x18] sm:$0xff] }
 0x352   :  { %1832 = vrot.lane.b32.xlu1 %v1809_v6, %s2792_s4  ;;  %v2265_v6 = vld [vmem:[%s4404_s9] sm:$0xff]  ;;  %s2768_s9 = scalar_lea.vmem %s2368_s2, 32 }
 0x353   :  { %1830 = vrot.lane.b32.xlu0 %v1808_v7, %s2792_s4  ;;  %v2631_v7 = vld [vmem:[%s4403_s8] ss:$0 sm:$0xff]  ;;  %p2769_p0 = scmp.ne.s32.totalorder %s2368_s2, %s2768_s9  ;;  %p2774_p2 = scmp.lt.s32.totalorder %s2768_s9, %s2768_s9 }
 0x355   :  { %p2775_p3 = por %p2774_p2, %p2773_p1 }
 0x357   :  { %p2776_p4 = pnand %p2775_p3, %p2769_p0 }
 0x3bc   :  { %v1913_v36 = vpop.permute.xlu1 %1912 }
 0x3bd   :  { %v1873_v26 = vpop.permute.xlu0 %1872  ;;  %v1914_v18 = vrot.slane %v1913_v36, 6 }
 0x3be   :  { %v1874_v9 = vrot.slane %v1873_v26, 6 }
 0x3bf   :  { %v1916_v56 = vsel %vm1915_vm13, %v1914_v18, %v1913_v36 }
 0x3c0   :  { %v1875_v1 = vsel %vm1847_vm6, %v1874_v9, %v1873_v26  ;;  %v1895_v32 = vpop.permute.xlu1 %1894  ;;  %vm2024_vm6 = vcmask 130048  }
 0x3c1   :  { %1880 = vst.msk [vmem:[#allocation5] sm:$0xf] %vm1879_vm12, %v1875_v1  ;;  %v1936_v10 = vpop.permute.xlu0 %1935 }
 0x3c2   :  { %1898 = vst.msk [vmem:[#allocation5 + $0x2] sm:$0x3] %vm1897_vm14, %v1895_v32  ;;  %v1937_v30 = vrot.slane %v1936_v10, 6 }
 0x3c3   :  { %1921 = vst.msk [vmem:[#allocation5 + $0x2] sm:$0xf] %vm1920_vm3, %v1916_v56 }
 0x3c4   :  { %v1939_v33 = vsel %vm1938_vm4, %v1937_v30, %v1936_v10  ;;  %v1833_v37 = vpop.permute.xlu1 %1832 }
 0x3c5   :  { %1944 = vst.msk [vmem:[#allocation5 + $0x4] sm:$0xf] %vm1943_vm5, %v1939_v33  ;;  %v1831_v35 = vpop.permute.xlu0 %1830 }
 0x3cc   :  { %v1945_v2 = vld [vmem:[#allocation5] sm:$0xff] }
 0x3cd   :  { %v2004_v47 = vcombine.high %v1945_v2, %v1945_v2  ;;  %v2011_v12 = vrot.slane %v1945_v2, %v4187_v20 }
 0x3cf   :  { %v2019_v58 = vcombine.high %v2011_v12, %v2011_v12  ;;  %v2018_v50 = vrot.slane %v2004_v47, %v4187_v20  ;;  %v2180_v20 = vld [vmem:[%s4402_s7 + $0x60] sm:$0xff] }
 0x3d1   :  { %2091 = vmatprep.mubr.f32.mxu1 %v2019_v58  ;;  %v2020_v3 = vcombine.high %v2018_v50, %v2018_v50 }
 0x3d2   :  { %2092 = vmatmul.mubr.f32.vlgmr.msra.gmra.mxu1 %v2011_v12 }
 0x3d3   :  { %2630 = vmatprep.mubr.msk.f32.mxu0 %vm2024_vm6, %v2020_v3  ;;  %2700 = vmatpush3.msra.mxu1 %v2182_v45 }
 0x3d4   :  { %2162 = vmatmul.mubr.f32.vlgmr.msra.gmra.mxu0 %v2018_v50  ;;  %2701 = vmatprep.subr.mxu1 %v4416_v4 }
 0x3d5   :  { %2702 = vmatpush3.msra.mxu1 %v2181_v46  ;;  %2729 = vmatprep.mubr.msk.f32.mxu1 %vm2798_vm7, %v4416_v4 }
 0x3d6   :  { %2703 = vmatprep.subr.mxu1 %v4416_v4  ;;  %2754 = vmatprep.mubr.msk.f32.mxu0 %vm2798_vm7, %v4416_v4 }
 0x3d7   :  { %2704 = vmatpush3.msra.mxu1 %v2180_v20  ;;  %2733 = vmatpush3.msk.msra.mxu0 %vm1153_vm2, %v2275_v60  ;;  %vm2190_vm2 = vcmask 982016  }
 0x3d8   :  { %2705 = vmatprep.subr.mxu1 %v4416_v4  ;;  %2734 = vmatprep.subr.mxu0 %v4416_v4 }
 0x3d9   :  { %2706 = vmatpush3.msra.mxu1 %v2179_v39  ;;  %2735 = vmatpush3.msra.mxu0 %v2274_v22 }
 0x3da   :  { %2707 = vmatprep.subr.mxu1 %v4416_v4  ;;  %2736 = vmatprep.subr.mxu0 %v4416_v4 }
 0x3db   :  { %2708 = vmatpush3.msra.mxu1 %v2178_v34  ;;  %2737 = vmatpush3.msra.mxu0 %v2273_v41 }
 0x3dc   :  { %2709 = vmatprep.subr.mxu1 %v4416_v4  ;;  %2738 = vmatprep.subr.mxu0 %v4416_v4 }
 0x3dd   :  { %2710 = vmatpush3.msra.mxu1 %v2177_v48  ;;  %2739 = vmatpush3.msra.mxu0 %v2272_v43 }
 0x3de   :  { %2711 = vmatprep.subr.mxu1 %v4416_v4  ;;  %2740 = vmatprep.subr.mxu0 %v4416_v4 }
 0x3df   :  { %2712 = vmatpush3.msra.mxu1 %v2176_v14  ;;  %2741 = vmatpush3.msra.mxu0 %v2271_v17 }
 0x3e0   :  { %2713 = vmatprep.subr.mxu1 %v4416_v4  ;;  %2742 = vmatprep.subr.mxu0 %v4416_v4 }
 0x3e1   :  { %2714 = vmatpush3.msra.mxu1 %v2175_v42  ;;  %2743 = vmatpush3.msra.mxu0 %v2270_v44 }
 0x3e2   :  { %2715 = vmatprep.subr.mxu1 %v4416_v4  ;;  %2744 = vmatprep.subr.mxu0 %v4416_v4 }
 0x3e3   :  { %2716 = vmatpush3.msra.mxu1 %v2174_v55  ;;  %2745 = vmatpush3.msra.mxu0 %v2269_v57 }
 0x3e4   :  { %2717 = vmatprep.subr.mxu1 %v4416_v4  ;;  %2746 = vmatprep.subr.mxu0 %v4416_v4 }
 0x3e5   :  { %2718 = vmatpush3.msra.mxu1 %v2173_v11  ;;  %2747 = vmatpush3.msra.mxu0 %v2268_v40 }
 0x3e6   :  { %2719 = vmatprep.subr.mxu1 %v4416_v4  ;;  %2748 = vmatprep.subr.mxu0 %v4416_v4 }
 0x3e7   :  { %2720 = vmatpush3.msra.mxu1 %v2172_v13  ;;  %2749 = vmatpush3.msra.mxu0 %v2267_v16 }
 0x3e8   :  { %2721 = vmatprep.subr.mxu1 %v4416_v4  ;;  %2750 = vmatprep.subr.mxu0 %v4416_v4 }
 0x3e9   :  { %2722 = vmatpush3.msra.mxu1 %v2171_v23  ;;  %2751 = vmatpush3.msra.mxu0 %v2266_v21 }
 0x3ea   :  { %2723 = vmatprep.subr.mxu1 %v4416_v4  ;;  %2752 = vmatprep.subr.mxu0 %v4416_v4 }
 0x3eb   :  { %2724 = vmatpush3.msra.mxu1 %v2170_v38  ;;  %2753 = vmatpush3.msra.mxu0 %v2265_v6 }
 0x3ec   :  { %2725 = vmatprep.subr.mxu1 %v4416_v4 }
 0x3ed   :  { %2726 = vmatpush3.msra.mxu1 %v2169_v51 }
 0x3ee   :  { %2727 = vmatprep.subr.mxu1 %v4416_v4 }
 0x3ef   :  { %2728 = vmatpush3.msra.mxu1 %v2168_v59 }
 0x492   :  { %v2668_v5 = vpop.f32.mrf.mxu1 }
 0x494   :  { %v2669_v61 = vpop.f32.mrf.mxu1  ;;  %v2163_v28 = vpop.f32.mrf.mxu0 }
 0x495   :  { %v2670_v62 = vadd.f32 %v2669_v61, %v2668_v5 }
 0x496   :  { %v2165_v24 = vpop.f32.mrf.mxu0 }
 0x497   :  { %v2094_v19 = vadd.f32 %v2670_v62, %v2629_v52 }
 0x499   :  { %v2164_v53 = vadd.f32 %v2163_v28, %v2094_v19 }
 0x49b   :  { %v2167_v54 = vmax.f32 %v2164_v53, 0.0 }
 0x49d   :  { %2730 = vmatmul.mubr.msk.f32.vlgmr.msra.gmra.mxu1 %vm2190_vm2, %v2167_v54 }
 0x55d   :  { %v2260_v25 = vpop.f32.mrf.mxu1 }
 0x55e   :  { %v2261_v8 = vadd.f32 %v2631_v7, %v2260_v25 }
 0x55f   :  { %v2731_v31 = vpop.f32.mrf.mxu1 }
 0x560   :  { %v2264_v15 = vmax.f32 %v2261_v8, 0.0 }
 0x562   :  { %2755 = vmatmul.mubr.msk.f32.vlgmr.msra.gmra.mxu0 %vm1054_vm1, %v2264_v15 }
 0x622   :  { %v2355_v0 = vpop.f32.mrf.mxu0 }
 0x623   :  { %v2356_v4 = vadd.f32 %v2633_v63, %v2355_v0 }
 0x624   :  { %v2756_v27 = vpop.f32.mrf.mxu0 }
 0x625   :  { %2360 = vst.msk [vmem:[#allocation6] sm:$0x3] %vm2359_vm8, %v2356_v4 }
 0x626   :  { %2779 = shalt.err (!%p2776_p4)
}
 0x627   :  { %2370 = dma.vmem_to_hbm [thread:$0]  %s2368_s2, 32, %s4406_s11, [#allocation7]  }
 0x628   :  { %2788 = dma.done.wait [#allocation7], 32  }
 0x629   :  { %2789 = vsyncadd [#allocation7], 4294967264 }
 0x62a   :  { %2374 = vsyncpa [#allocation7], 1 }

</bundles_post_ra>
